<compile_context>
chip_gen: v7x
topology: tpu7x:2x2x1
jax: 0.10.0
libtpu: 0.0.40
codegen_flags: <defaults>
</compile_context>

<pallas_src>
import jax
import jax.numpy as jnp
from jax import lax
from jax.experimental import pallas as pl
from jax.experimental.pallas import tpu as pltpu


BLK = 8  # batch rows per grid block (one sublane tile)


# ----------------------------------------------------------------------------
# Kernel
# ----------------------------------------------------------------------------
def make_sliding_rnn_kernel(T, C, S, L, Tw, n_mlp,
                            recursive_residual, sliding_long_term):
    """Builds the Pallas kernel body for the given static configuration."""
    S3 = 3 * S
    LD = BLK * C
    n_in = 2 + 4 + 2 * (L - 1) + 2 + 4 * n_mlp + 6

    def kernel(*refs):
        in_refs = refs[:n_in]
        out_ref = refs[n_in]                       # (1, T, LD) lane-dense

        it = iter(in_refs)
        x_ld_ref = next(it)                        # (1, T, LD)
        x_bp_ref = next(it)                        # (1, T*BLK, C)
        # ---- GRU-path weights: hoisted (reused Tw times per frame) --------
        w0_ih = next(it)[...]                      # (C, 3S)
        b0_ih = next(it)[...]                      # (1, 3S)
        w_hh_blk = next(it)[...]                   # (L*S, L*3S) block-diagonal
        b_hh = next(it)[...]                       # (1, L*3S)
        w_ih_hi = [(next(it)[...], next(it)[...]) for _ in range(L - 1)]
        w_dec = next(it)[...]                      # (S, C)
        b_dec = next(it)[...]                      # (1, C)
        # ---- MLP / merge weights: loaded once per frame inside the loop ---
        mlp_refs = [tuple(next(it) for _ in range(4)) for _ in range(n_mlp)]
        w_mrg_ref = next(it)                       # (1, N)
        gw_out_ref = next(it)                      # (LD, C) = tile(w_out.T)
        b_fus_ref = next(it)                       # (1, C)  fused bias
        m_avg_ref = next(it)                       # (LD, LD) segment-mean
        # ---- layout helper constants ---------------------------------------
        tile_eye = next(it)[...]                   # (C, LD)
        blkmask = next(it)[...]                    # (BLK, LD)

        x_ld = x_ld_ref[0]                         # (T, LD) lane-dense frames
        x_bp = x_bp_ref[0]                         # (T*BLK, C) batch-on-sublane

        def to_lane_dense(rows):                   # (BLK, C) -> (1, LD)
            rep = jnp.dot(rows, tile_eye, preferred_element_type=jnp.float32)
            return jnp.sum(rep * blkmask, axis=0, keepdims=True)

        # layer-0 input->hidden projections of the initial GRU window,
        # rolled across frames (only the new frame is projected per step).
        gi0_win0 = jnp.dot(x_bp[(T - Tw) * BLK:T * BLK, :], w0_ih,
                           preferred_element_type=jnp.float32) + b0_ih
        last_in_bp = x_bp[(T - 1) * BLK:T * BLK, :]          # (BLK, C)
        row_ids = lax.broadcasted_iota(jnp.int32, (T, LD), 0)

        def frame_step(t, carry):
            last_bp, hist, gi0_win, out_acc = carry

            # ---------------- stacked GRU over the sliding window ----------
            hs = jnp.zeros((BLK, L * S), jnp.float32)
            for k in range(Tw):                    # static unroll (small Tw)
                gi0 = gi0_win[k * BLK:(k + 1) * BLK, :]
                # fused hidden->hidden matmul for all layers (block-diag)
                gh_all = jnp.dot(hs, w_hh_blk,
                                 preferred_element_type=jnp.float32) + b_hh
                new_h, inp = [], None
                for l in range(L):
                    gh = gh_all[:, l * S3:(l + 1) * S3]
                    if l == 0:
                        gi = gi0
                    else:
                        w_ih_l, b_ih_l = w_ih_hi[l - 1]
                        gi = jnp.dot(inp, w_ih_l,
                                     preferred_element_type=jnp.float32) + b_ih_l
                    r = jax.nn.sigmoid(gi[:, 0:S] + gh[:, 0:S])
                    z = jax.nn.sigmoid(gi[:, S:2 * S] + gh[:, S:2 * S])
                    g = jnp.tanh(gi[:, 2 * S:S3] + r * gh[:, 2 * S:S3])
                    h_new = (1.0 - z) * g + z * hs[:, l * S:(l + 1) * S]
                    new_h.append(h_new)
                    inp = h_new
                hs = jnp.concatenate(new_h, axis=1)
            enc_last = hs[:, (L - 1) * S:]                   # (BLK, S)

            # fc_decoder, kept in registers (no VMEM round trip)
            dec = jnp.dot(enc_last, w_dec,
                          preferred_element_type=jnp.float32) + b_dec  # (BLK, C)
            dec_ld = to_lane_dense(dec)                                # (1, LD)

            # -------- siMLPe-mini on cat([history, dec]), lane-dense (N, LD)
            m = jnp.concatenate([hist, dec_ld], axis=0)                # (N, LD)
            m_avg = m_avg_ref[...]
            for w_t_ref, b_t_ref, a_ref, be_ref in mlp_refs:
                x_ = (jnp.dot(w_t_ref[...], m,
                              preferred_element_type=jnp.float32)
                      + b_t_ref[...])
                mu = jnp.dot(x_, m_avg, preferred_element_type=jnp.float32)
                xc = x_ - mu
                var = jnp.dot(xc * xc, m_avg,
                              preferred_element_type=jnp.float32)
                m = m + (xc * lax.rsqrt(var + 1e-5)) * a_ref[...] + be_ref[...]

            # fused temporal_merge_fc . motion_fc_out (bias folded in wrapper)
            row_ld = jnp.dot(w_mrg_ref[...], m,
                             preferred_element_type=jnp.float32)       # (1, LD)
            merged = (jnp.dot(row_ld * blkmask, gw_out_ref[...],
                              preferred_element_type=jnp.float32)
                      + b_fus_ref[...])                                # (BLK, C)

            base = last_bp if recursive_residual else last_in_bp
            new_bp = merged + base                                     # (BLK, C)
            new_ld = to_lane_dense(new_bp)                             # (1, LD)

            out_acc = jnp.where(row_ids == t, new_ld, out_acc)
            if sliding_long_term:
                hist = (jnp.concatenate([hist[1:, :], new_ld], axis=0)
                        if T > 1 else new_ld)
            gi0_new = jnp.dot(new_bp, w0_ih,
                              preferred_element_type=jnp.float32) + b0_ih
            gi0_win = (jnp.concatenate([gi0_win[BLK:, :], gi0_new], axis=0)
                       if Tw > 1 else gi0_new)
            return new_bp, hist, gi0_win, out_acc

        init = (last_in_bp, x_ld, gi0_win0, jnp.zeros((T, LD), jnp.float32))
        _, _, _, out_acc = lax.fori_loop(0, T, frame_step, init)

        # one contiguous lane-dense writeback of all generated frames
        out_ref[0, :, :] = out_acc

    return kernel


# ----------------------------------------------------------------------------
# Wrapper
# ----------------------------------------------------------------------------
def sliding_rnn_v3_forward(x, params, *, window_size, state_size, num_layers,
                           mlp_layers, recursive_residual=True,
                           sliding_long_term=True):
    B, T, C = x.shape
    N = T + 1
    assert C == N, ("SlidingRNN_v3 shape constraint: config.motion.dim must "
                    "equal h36m_input_length_dct + 1")
    assert window_size == N, ("temporal_merge_fc / Temporal_FC require "
                              "window_size == h36m_input_length_dct + 1")
    Tw = min(window_size, T)         # matches the module's negative slicing
    S, L = state_size, num_layers
    NB = -(-B // BLK)                # batch blocks (grid steps)
    Bp = NB * BLK
    LD = BLK * C
    f32 = jnp.float32

    # ---- input in both layouts (tiny; avoids in-kernel relayouts) ----------
    x32 = x.astype(f32)
    x_pad = jnp.zeros((Bp, T, C), f32).at[:B].set(x32)
    x_blk = jnp.transpose(x_pad.reshape(NB, BLK, T, C), (0, 2, 1, 3))
    x_ld = x_blk.reshape(NB, T, LD)          # lane-dense (time, batch*feature)
    x_bp = x_blk.reshape(NB, T * BLK, C)     # time-major, batch on sublanes

    # ---- GRU weights --------------------------------------------------------
    w0_ih = params["gru"][0][0].T.astype(f32)            # (C, 3S)
    b0_ih = params["gru"][0][2][None, :].astype(f32)     # (1, 3S)
    w_hh_blk = jnp.zeros((L * S, L * 3 * S), f32)
    b_hh = jnp.zeros((1, L * 3 * S), f32)
    for l in range(L):
        w_hh_blk = w_hh_blk.at[l * S:(l + 1) * S,
                               l * 3 * S:(l + 1) * 3 * S].set(
            params["gru"][l][1].T.astype(f32))
        b_hh = b_hh.at[0, l * 3 * S:(l + 1) * 3 * S].set(
            params["gru"][l][3].astype(f32))
    hi = []
    for l in range(1, L):
        hi += [params["gru"][l][0].T.astype(f32),         # (S, 3S)
               params["gru"][l][2][None, :].astype(f32)]  # (1, 3S)

    w_dec = params["w_dec"].T.astype(f32)                 # (S, C)
    b_dec = params["b_dec"][None, :].astype(f32)          # (1, C)

    # ---- MLP weights (no kron expansion) ------------------------------------
    mlp_in = []
    for i in range(mlp_layers):
        w_t, b_t, alpha, beta = params["mlp"][i]
        mlp_in += [w_t.astype(f32),                               # (N, N)
                   jnp.tile(b_t.astype(f32)[:, None], (1, LD)),   # (N, LD)
                   jnp.tile(alpha.astype(f32), BLK)[None, :],     # (1, LD)
                   jnp.tile(beta.astype(f32), BLK)[None, :]]      # (1, LD)

    # fused temporal_merge_fc . motion_fc_out (bias: sum(w_mrg)*b_out + b_mrg)
    w_mrg = params["w_mrg"].astype(f32)                           # (1, N)
    gw_out = jnp.tile(params["w_out"].T.astype(f32), (BLK, 1))    # (LD, C)
    b_fus = (jnp.sum(params["w_mrg"]) * params["b_out"]
             + params["b_mrg"][0])[None, :].astype(f32)           # (1, C)

    # ---- layout helper constants --------------------------------------------
    m_avg = jnp.kron(jnp.eye(BLK, dtype=f32),
                     jnp.full((C, C), 1.0 / C, f32))              # (LD, LD)
    tile_eye = jnp.tile(jnp.eye(C, dtype=f32), (1, BLK))          # (C, LD)
    blkmask = jnp.repeat(jnp.eye(BLK, dtype=f32), C, axis=1)      # (BLK, LD)

    inputs = ([x_ld, x_bp, w0_ih, b0_ih, w_hh_blk, b_hh] + hi
              + [w_dec, b_dec] + mlp_in
              + [w_mrg, gw_out, b_fus, m_avg, tile_eye, blkmask])

    def full2d(a):
        return pl.BlockSpec(tuple(a.shape), lambda i: (0, 0))

    in_specs = ([pl.BlockSpec((1, T, LD), lambda i: (i, 0, 0)),
                 pl.BlockSpec((1, T * BLK, C), lambda i: (i, 0, 0))]
                + [full2d(a) for a in inputs[2:]])

    kernel = make_sliding_rnn_kernel(T, C, S, L, Tw, mlp_layers,
                                     recursive_residual, sliding_long_term)

    out_ld = pl.pallas_call(
        kernel,
        out_shape=jax.ShapeDtypeStruct((NB, T, LD), f32),
        grid_spec=pltpu.PrefetchScalarGridSpec(
            num_scalar_prefetch=0,
            grid=(NB,),                                    # batch blocks
            in_specs=in_specs,
            out_specs=pl.BlockSpec((1, T, LD), lambda i: (i, 0, 0))),
        compiler_params=pltpu.CompilerParams(
            dimension_semantics=("parallel",),             # v7x: 2 TCs
            vmem_limit_bytes=32 * 1024 * 1024),
    )(*inputs)

    out = out_ld.reshape(NB, T, BLK, C).transpose(0, 2, 1, 3).reshape(Bp, T, C)
    return out[:B]


# ----------------------------------------------------------------------------
# Deterministic parameter init (synthetic; shapes from the module __init__)
# ----------------------------------------------------------------------------
def init_params(key, C, S, L, N, mlp_layers):
    keys = iter(jax.random.split(key, 12 + 4 * L + 4 * mlp_layers))
    params = {"gru": [], "mlp": []}
    for l in range(L):
        in_dim = C if l == 0 else S
        params["gru"].append((
            0.2 * jax.random.normal(next(keys), (3 * S, in_dim), jnp.float32),
            0.2 * jax.random.normal(next(keys), (3 * S, S), jnp.float32),
            0.1 * jax.random.normal(next(keys), (3 * S,), jnp.float32),
            0.1 * jax.random.normal(next(keys), (3 * S,), jnp.float32),
        ))
    params["w_dec"] = 0.1 * jax.random.normal(next(keys), (C, S), jnp.float32)
    params["b_dec"] = 0.05 * jax.random.normal(next(keys), (C,), jnp.float32)
    for i in range(mlp_layers):
        params["mlp"].append((
            0.1 * jax.random.normal(next(keys), (N, N), jnp.float32),   # Temporal_FC
            0.05 * jax.random.normal(next(keys), (N,), jnp.float32),
            1.0 + 0.1 * jax.random.normal(next(keys), (C,), jnp.float32),  # LN alpha
            0.05 * jax.random.normal(next(keys), (C,), jnp.float32),       # LN beta
        ))
    params["w_out"] = 0.1 * jax.random.normal(next(keys), (C, N), jnp.float32)
    params["b_out"] = 0.05 * jax.random.normal(next(keys), (C,), jnp.float32)
    params["w_mrg"] = 0.1 * jax.random.normal(next(keys), (1, N), jnp.float32)
    params["b_mrg"] = 0.05 * jax.random.normal(next(keys), (1,), jnp.float32)
    return params


# ----------------------------------------------------------------------------
# Pure-JAX reference (mirrors the PyTorch forward) for a sanity check
# ----------------------------------------------------------------------------
def _gru_ref(seq, gru_params, S):
    B, Tw, _ = seq.shape
    hs = [jnp.zeros((B, S), jnp.float32) for _ in gru_params]
    for k in range(Tw):
        inp = seq[:, k, :]
        for l, (w_ih, w_hh, b_ih, b_hh) in enumerate(gru_params):
            gi = inp @ w_ih.T + b_ih
            gh = hs[l] @ w_hh.T + b_hh
            r = jax.nn.sigmoid(gi[:, :S] + gh[:, :S])
            z = jax.nn.sigmoid(gi[:, S:2 * S] + gh[:, S:2 * S])
            n = jnp.tanh(gi[:, 2 * S:] + r * gh[:, 2 * S:])
            hs[l] = (1.0 - z) * n + z * hs[l]
            inp = hs[l]
    return hs[-1]


def _mlp_mini_ref(m, params, mlp_layers):
    z = jnp.transpose(m, (0, 2, 1))                       # (B, C, N)
    for i in range(mlp_layers):
        w_t, b_t, alpha, beta = params["mlp"][i]
        x_ = jnp.einsum('bcn,mn->bcm', z, w_t) + b_t
        mu = jnp.mean(x_, axis=1, keepdims=True)
        var = jnp.mean((x_ - mu) ** 2, axis=1, keepdims=True)
        y = (x_ - mu) / jnp.sqrt(var + 1e-5)
        y = y * alpha[None, :, None] + beta[None, :, None]
        z = z + y
    za = jnp.transpose(z, (0, 2, 1))                      # (B, N, C)
    fo = za @ params["w_out"].T + params["b_out"]
    ft = jnp.transpose(fo, (0, 2, 1))                     # (B, C, N)
    mg = ft @ params["w_mrg"].T + params["b_mrg"]         # (B, C, 1)
    return jnp.transpose(mg, (0, 2, 1))                   # (B, 1, C)


def reference_forward(x, params, *, window_size, mlp_layers,
                      recursive_residual=True, sliding_long_term=True):
    B, T, C = x.shape
    S = params["gru"][0][1].shape[1]
    last_input_frame = x[:, -1:, :]
    last_rnn_input = last_input_frame
    short = x[:, -window_size:, :]
    hist = x
    outs = []
    for _ in range(T):
        enc_last = _gru_ref(short, params["gru"], S)
        dec = (enc_last @ params["w_dec"].T + params["b_dec"])[:, None, :]
        mlp_in = jnp.concatenate([hist, dec], axis=1)
        mlp_out = _mlp_mini_ref(mlp_in, params, mlp_layers)
        base = last_rnn_input if recursive_residual else last_input_frame
        new_frame = mlp_out + base
        outs.append(new_frame)
        last_rnn_input = new_frame
        short = jnp.concatenate([short[:, 1:, :], new_frame], axis=1)
        if sliding_long_term:
            hist = jnp.concatenate([hist[:, 1:, :], new_frame], axis=1)
    return jnp.concatenate(outs, axis=1)


# ----------------------------------------------------------------------------
if __name__ == "__main__":
    # Demo config: T = h36m_input_length_dct = 7, C = motion.dim = T+1 = 8,
    # window_size = T+1 = 8 (required for the module's Linear shapes to match).
    B, T = 2, 7
    C = T + 1
    window_size = T + 1
    state_size, num_layers, mlp_layers = 16, 2, 2

    key = jax.random.PRNGKey(0)
    kx, kp = jax.random.split(key)
    x = jax.random.normal(kx, (B, T, C), jnp.float32)
    params = init_params(kp, C, state_size, num_layers, T + 1, mlp_layers)

    out = sliding_rnn_v3_forward(
        x, params, window_size=window_size, state_size=state_size,
        num_layers=num_layers, mlp_layers=mlp_layers,
        recursive_residual=True, sliding_long_term=True)
    out = jax.block_until_ready(out)

    ref = reference_forward(
        x, params, window_size=window_size, mlp_layers=mlp_layers,
        recursive_residual=True, sliding_long_term=True)

    assert out.shape == (B, T, C)
    err = float(jnp.max(jnp.abs(out - ref)))
    assert err < 2e-3, f"kernel/reference mismatch: max abs err = {err}"
    print("KERNEL_OK")
</pallas_src>

<mosaic_0001>
module attributes {stable_mosaic.version = 11 : i64} {
  func.func @kernel(%arg0: i32, %arg1: memref<1x7x64xf32, #tpu.memory_space<vmem>>, %arg2: memref<1x56x8xf32, #tpu.memory_space<vmem>>, %arg3: memref<8x48xf32, #tpu.memory_space<vmem>>, %arg4: memref<1x48xf32, #tpu.memory_space<vmem>>, %arg5: memref<32x96xf32, #tpu.memory_space<vmem>>, %arg6: memref<1x96xf32, #tpu.memory_space<vmem>>, %arg7: memref<16x48xf32, #tpu.memory_space<vmem>>, %arg8: memref<1x48xf32, #tpu.memory_space<vmem>>, %arg9: memref<16x8xf32, #tpu.memory_space<vmem>>, %arg10: memref<1x8xf32, #tpu.memory_space<vmem>>, %arg11: memref<8x8xf32, #tpu.memory_space<vmem>>, %arg12: memref<8x64xf32, #tpu.memory_space<vmem>>, %arg13: memref<1x64xf32, #tpu.memory_space<vmem>>, %arg14: memref<1x64xf32, #tpu.memory_space<vmem>>, %arg15: memref<8x8xf32, #tpu.memory_space<vmem>>, %arg16: memref<8x64xf32, #tpu.memory_space<vmem>>, %arg17: memref<1x64xf32, #tpu.memory_space<vmem>>, %arg18: memref<1x64xf32, #tpu.memory_space<vmem>>, %arg19: memref<1x8xf32, #tpu.memory_space<vmem>>, %arg20: memref<64x8xf32, #tpu.memory_space<vmem>>, %arg21: memref<1x8xf32, #tpu.memory_space<vmem>>, %arg22: memref<64x64xf32, #tpu.memory_space<vmem>>, %arg23: memref<8x64xf32, #tpu.memory_space<vmem>>, %arg24: memref<8x64xf32, #tpu.memory_space<vmem>>, %arg25: memref<1x7x64xf32, #tpu.memory_space<vmem>>) attributes {dimension_semantics = [#tpu.dimension_semantics<parallel>], iteration_bounds = array<i64: 1>, scalar_prefetch = 0 : i64, scratch_operands = 0 : i64, tpu.core_type = #tpu.core_type<tc>, window_params = [{transform_indices = @transform_0, window_bounds = array<i64: 1, 7, 64>}, {transform_indices = @transform_1, window_bounds = array<i64: 1, 56, 8>}, {pipeline_mode = #tpu.pipeline_mode<synchronous>, transform_indices = @transform_2, window_bounds = array<i64: 8, 48>}, {pipeline_mode = #tpu.pipeline_mode<synchronous>, transform_indices = @transform_3, window_bounds = array<i64: 1, 48>}, {pipeline_mode = #tpu.pipeline_mode<synchronous>, transform_indices = @transform_4, window_bounds = array<i64: 32, 96>}, {pipeline_mode = #tpu.pipeline_mode<synchronous>, transform_indices = @transform_5, window_bounds = array<i64: 1, 96>}, {pipeline_mode = #tpu.pipeline_mode<synchronous>, transform_indices = @transform_6, window_bounds = array<i64: 16, 48>}, {pipeline_mode = #tpu.pipeline_mode<synchronous>, transform_indices = @transform_7, window_bounds = array<i64: 1, 48>}, {pipeline_mode = #tpu.pipeline_mode<synchronous>, transform_indices = @transform_8, window_bounds = array<i64: 16, 8>}, {pipeline_mode = #tpu.pipeline_mode<synchronous>, transform_indices = @transform_9, window_bounds = array<i64: 1, 8>}, {pipeline_mode = #tpu.pipeline_mode<synchronous>, transform_indices = @transform_10, window_bounds = array<i64: 8, 8>}, {pipeline_mode = #tpu.pipeline_mode<synchronous>, transform_indices = @transform_11, window_bounds = array<i64: 8, 64>}, {pipeline_mode = #tpu.pipeline_mode<synchronous>, transform_indices = @transform_12, window_bounds = array<i64: 1, 64>}, {pipeline_mode = #tpu.pipeline_mode<synchronous>, transform_indices = @transform_13, window_bounds = array<i64: 1, 64>}, {pipeline_mode = #tpu.pipeline_mode<synchronous>, transform_indices = @transform_14, window_bounds = array<i64: 8, 8>}, {pipeline_mode = #tpu.pipeline_mode<synchronous>, transform_indices = @transform_15, window_bounds = array<i64: 8, 64>}, {pipeline_mode = #tpu.pipeline_mode<synchronous>, transform_indices = @transform_16, window_bounds = array<i64: 1, 64>}, {pipeline_mode = #tpu.pipeline_mode<synchronous>, transform_indices = @transform_17, window_bounds = array<i64: 1, 64>}, {pipeline_mode = #tpu.pipeline_mode<synchronous>, transform_indices = @transform_18, window_bounds = array<i64: 1, 8>}, {pipeline_mode = #tpu.pipeline_mode<synchronous>, transform_indices = @transform_19, window_bounds = array<i64: 64, 8>}, {pipeline_mode = #tpu.pipeline_mode<synchronous>, transform_indices = @transform_20, window_bounds = array<i64: 1, 8>}, {pipeline_mode = #tpu.pipeline_mode<synchronous>, transform_indices = @transform_21, window_bounds = array<i64: 64, 64>}, {pipeline_mode = #tpu.pipeline_mode<synchronous>, transform_indices = @transform_22, window_bounds = array<i64: 8, 64>}, {pipeline_mode = #tpu.pipeline_mode<synchronous>, transform_indices = @transform_23, window_bounds = array<i64: 8, 64>}, {transform_indices = @transform_24, window_bounds = array<i64: 1, 7, 64>}]} {
    %c0 = arith.constant 0 : index
    %c0_0 = arith.constant 0 : index
    %0 = vector.load %arg3[%c0, %c0_0] : memref<8x48xf32, #tpu.memory_space<vmem>>, vector<8x48xf32>
    %c0_1 = arith.constant 0 : index
    %c0_2 = arith.constant 0 : index
    %1 = vector.load %arg4[%c0_1, %c0_2] : memref<1x48xf32, #tpu.memory_space<vmem>>, vector<1x48xf32>
    %c0_3 = arith.constant 0 : index
    %c0_4 = arith.constant 0 : index
    %2 = vector.load %arg5[%c0_3, %c0_4] : memref<32x96xf32, #tpu.memory_space<vmem>>, vector<32x96xf32>
    %c0_5 = arith.constant 0 : index
    %c0_6 = arith.constant 0 : index
    %3 = vector.load %arg6[%c0_5, %c0_6] : memref<1x96xf32, #tpu.memory_space<vmem>>, vector<1x96xf32>
    %c0_7 = arith.constant 0 : index
    %c0_8 = arith.constant 0 : index
    %4 = vector.load %arg7[%c0_7, %c0_8] : memref<16x48xf32, #tpu.memory_space<vmem>>, vector<16x48xf32>
    %c0_9 = arith.constant 0 : index
    %c0_10 = arith.constant 0 : index
    %5 = vector.load %arg8[%c0_9, %c0_10] : memref<1x48xf32, #tpu.memory_space<vmem>>, vector<1x48xf32>
    %c0_11 = arith.constant 0 : index
    %c0_12 = arith.constant 0 : index
    %6 = vector.load %arg9[%c0_11, %c0_12] : memref<16x8xf32, #tpu.memory_space<vmem>>, vector<16x8xf32>
    %c0_13 = arith.constant 0 : index
    %c0_14 = arith.constant 0 : index
    %7 = vector.load %arg10[%c0_13, %c0_14] : memref<1x8xf32, #tpu.memory_space<vmem>>, vector<1x8xf32>
    %c0_15 = arith.constant 0 : index
    %c0_16 = arith.constant 0 : index
    %8 = vector.load %arg23[%c0_15, %c0_16] : memref<8x64xf32, #tpu.memory_space<vmem>>, vector<8x64xf32>
    %c0_17 = arith.constant 0 : index
    %c0_18 = arith.constant 0 : index
    %9 = vector.load %arg24[%c0_17, %c0_18] : memref<8x64xf32, #tpu.memory_space<vmem>>, vector<8x64xf32>
    %c0_19 = arith.constant 0 : index
    %c0_20 = arith.constant 0 : index
    %c0_21 = arith.constant 0 : index
    %10 = vector.load %arg1[%c0_19, %c0_20, %c0_21] : memref<1x7x64xf32, #tpu.memory_space<vmem>>, vector<1x7x64xf32>
    %11 = vector.shape_cast %10 : vector<1x7x64xf32> to vector<7x64xf32>
    %c0_22 = arith.constant 0 : index
    %c0_23 = arith.constant 0 : index
    %c0_24 = arith.constant 0 : index
    %12 = vector.load %arg2[%c0_22, %c0_23, %c0_24] : memref<1x56x8xf32, #tpu.memory_space<vmem>>, vector<1x56x8xf32>
    %13 = vector.shape_cast %12 : vector<1x56x8xf32> to vector<56x8xf32>
    %cst = arith.constant dense<0.000000e+00> : vector<56x48xf32>
    %14 = tpu.matmul %13, %0, %cst {dimension_numbers = #tpu.dot_dimension_numbers<[1], [0], [0], [1], [0, 0, 1, 1], [], []>} : vector<56x8xf32>, vector<8x48xf32>, vector<56x48xf32> -> vector<56x48xf32>
    %15 = vector.broadcast %1 : vector<1x48xf32> to vector<56x48xf32>
    %16 = arith.addf %14, %15 : vector<56x48xf32>
    %17 = vector.extract_strided_slice %13 {offsets = [48, 0], sizes = [8, 8], strides = [1, 1]} : vector<56x8xf32> to vector<8x8xf32>
    %18 = tpu.iota {dimensions = array<i32: 0>} : vector<7x64xi32>
    %cst_25 = arith.constant 0.000000e+00 : f32
    %19 = vector.broadcast %cst_25 : f32 to vector<7x64xf32>
    %c0_i32 = arith.constant 0 : i32
    %c7_i32 = arith.constant 7 : i32
    %20 = arith.addi %c0_i32, %c7_i32 : i32
    %c1_i32 = arith.constant 1 : i32
    %21:4 = scf.for %arg26 = %c0_i32 to %20 step %c1_i32 iter_args(%arg27 = %17, %arg28 = %11, %arg29 = %16, %arg30 = %19) -> (vector<8x8xf32>, vector<7x64xf32>, vector<56x48xf32>, vector<7x64xf32>)  : i32 {
      %cst_30 = arith.constant 0.000000e+00 : f32
      %25 = vector.broadcast %cst_30 : f32 to vector<8x32xf32>
      %26 = vector.extract_strided_slice %arg29 {offsets = [0, 0], sizes = [8, 48], strides = [1, 1]} : vector<56x48xf32> to vector<8x48xf32>
      %cst_31 = arith.constant dense<0.000000e+00> : vector<8x96xf32>
      %27 = tpu.matmul %25, %2, %cst_31 {dimension_numbers = #tpu.dot_dimension_numbers<[1], [0], [0], [1], [0, 0, 1, 1], [], []>} : vector<8x32xf32>, vector<32x96xf32>, vector<8x96xf32> -> vector<8x96xf32>
      %28 = vector.broadcast %3 : vector<1x96xf32> to vector<8x96xf32>
      %29 = arith.addf %27, %28 : vector<8x96xf32>
      %30 = vector.extract_strided_slice %29 {offsets = [0, 0], sizes = [8, 48], strides = [1, 1]} : vector<8x96xf32> to vector<8x48xf32>
      %31 = vector.extract_strided_slice %26 {offsets = [0, 0], sizes = [8, 16], strides = [1, 1]} : vector<8x48xf32> to vector<8x16xf32>
      %32 = vector.extract_strided_slice %30 {offsets = [0, 0], sizes = [8, 16], strides = [1, 1]} : vector<8x48xf32> to vector<8x16xf32>
      %33 = arith.addf %31, %32 : vector<8x16xf32>
      %34 = arith.negf %33 : vector<8x16xf32>
      %35 = math.exp %34 : vector<8x16xf32>
      %cst_32 = arith.constant 1.000000e+00 : f32
      %36 = vector.broadcast %cst_32 : f32 to vector<8x16xf32>
      %37 = arith.addf %36, %35 : vector<8x16xf32>
      %38 = arith.divf %36, %37 : vector<8x16xf32>
      %39 = vector.extract_strided_slice %26 {offsets = [0, 16], sizes = [8, 16], strides = [1, 1]} : vector<8x48xf32> to vector<8x16xf32>
      %40 = vector.extract_strided_slice %30 {offsets = [0, 16], sizes = [8, 16], strides = [1, 1]} : vector<8x48xf32> to vector<8x16xf32>
      %41 = arith.addf %39, %40 : vector<8x16xf32>
      %42 = arith.negf %41 : vector<8x16xf32>
      %43 = math.exp %42 : vector<8x16xf32>
      %cst_33 = arith.constant 1.000000e+00 : f32
      %44 = vector.broadcast %cst_33 : f32 to vector<8x16xf32>
      %45 = arith.addf %44, %43 : vector<8x16xf32>
      %46 = arith.divf %44, %45 : vector<8x16xf32>
      %47 = vector.extract_strided_slice %26 {offsets = [0, 32], sizes = [8, 16], strides = [1, 1]} : vector<8x48xf32> to vector<8x16xf32>
      %48 = vector.extract_strided_slice %30 {offsets = [0, 32], sizes = [8, 16], strides = [1, 1]} : vector<8x48xf32> to vector<8x16xf32>
      %49 = arith.mulf %38, %48 : vector<8x16xf32>
      %50 = arith.addf %47, %49 : vector<8x16xf32>
      %51 = math.tanh %50 : vector<8x16xf32>
      %cst_34 = arith.constant 1.000000e+00 : f32
      %52 = vector.broadcast %cst_34 : f32 to vector<8x16xf32>
      %53 = arith.subf %52, %46 : vector<8x16xf32>
      %54 = arith.mulf %53, %51 : vector<8x16xf32>
      %55 = vector.extract_strided_slice %25 {offsets = [0, 0], sizes = [8, 16], strides = [1, 1]} : vector<8x32xf32> to vector<8x16xf32>
      %56 = arith.mulf %46, %55 : vector<8x16xf32>
      %57 = arith.addf %54, %56 : vector<8x16xf32>
      %58 = vector.extract_strided_slice %29 {offsets = [0, 48], sizes = [8, 48], strides = [1, 1]} : vector<8x96xf32> to vector<8x48xf32>
      %cst_35 = arith.constant dense<0.000000e+00> : vector<8x48xf32>
      %59 = tpu.matmul %57, %4, %cst_35 {dimension_numbers = #tpu.dot_dimension_numbers<[1], [0], [0], [1], [0, 0, 1, 1], [], []>} : vector<8x16xf32>, vector<16x48xf32>, vector<8x48xf32> -> vector<8x48xf32>
      %60 = vector.broadcast %5 : vector<1x48xf32> to vector<8x48xf32>
      %61 = arith.addf %59, %60 : vector<8x48xf32>
      %62 = vector.extract_strided_slice %61 {offsets = [0, 0], sizes = [8, 16], strides = [1, 1]} : vector<8x48xf32> to vector<8x16xf32>
      %63 = vector.extract_strided_slice %58 {offsets = [0, 0], sizes = [8, 16], strides = [1, 1]} : vector<8x48xf32> to vector<8x16xf32>
      %64 = arith.addf %62, %63 : vector<8x16xf32>
      %65 = arith.negf %64 : vector<8x16xf32>
      %66 = math.exp %65 : vector<8x16xf32>
      %cst_36 = arith.constant 1.000000e+00 : f32
      %67 = vector.broadcast %cst_36 : f32 to vector<8x16xf32>
      %68 = arith.addf %67, %66 : vector<8x16xf32>
      %69 = arith.divf %67, %68 : vector<8x16xf32>
      %70 = vector.extract_strided_slice %61 {offsets = [0, 16], sizes = [8, 16], strides = [1, 1]} : vector<8x48xf32> to vector<8x16xf32>
      %71 = vector.extract_strided_slice %58 {offsets = [0, 16], sizes = [8, 16], strides = [1, 1]} : vector<8x48xf32> to vector<8x16xf32>
      %72 = arith.addf %70, %71 : vector<8x16xf32>
      %73 = arith.negf %72 : vector<8x16xf32>
      %74 = math.exp %73 : vector<8x16xf32>
      %cst_37 = arith.constant 1.000000e+00 : f32
      %75 = vector.broadcast %cst_37 : f32 to vector<8x16xf32>
      %76 = arith.addf %75, %74 : vector<8x16xf32>
      %77 = arith.divf %75, %76 : vector<8x16xf32>
      %78 = vector.extract_strided_slice %61 {offsets = [0, 32], sizes = [8, 16], strides = [1, 1]} : vector<8x48xf32> to vector<8x16xf32>
      %79 = vector.extract_strided_slice %58 {offsets = [0, 32], sizes = [8, 16], strides = [1, 1]} : vector<8x48xf32> to vector<8x16xf32>
      %80 = arith.mulf %69, %79 : vector<8x16xf32>
      %81 = arith.addf %78, %80 : vector<8x16xf32>
      %82 = math.tanh %81 : vector<8x16xf32>
      %cst_38 = arith.constant 1.000000e+00 : f32
      %83 = vector.broadcast %cst_38 : f32 to vector<8x16xf32>
      %84 = arith.subf %83, %77 : vector<8x16xf32>
      %85 = arith.mulf %84, %82 : vector<8x16xf32>
      %86 = vector.extract_strided_slice %25 {offsets = [0, 16], sizes = [8, 16], strides = [1, 1]} : vector<8x32xf32> to vector<8x16xf32>
      %87 = arith.mulf %77, %86 : vector<8x16xf32>
      %88 = arith.addf %85, %87 : vector<8x16xf32>
      %89 = tpu.concatenate %57, %88 in 1 : vector<8x16xf32>, vector<8x16xf32> -> vector<8x32xf32>
      %90 = vector.extract_strided_slice %arg29 {offsets = [8, 0], sizes = [8, 48], strides = [1, 1]} : vector<56x48xf32> to vector<8x48xf32>
      %cst_39 = arith.constant dense<0.000000e+00> : vector<8x96xf32>
      %91 = tpu.matmul %89, %2, %cst_39 {dimension_numbers = #tpu.dot_dimension_numbers<[1], [0], [0], [1], [0, 0, 1, 1], [], []>} : vector<8x32xf32>, vector<32x96xf32>, vector<8x96xf32> -> vector<8x96xf32>
      %92 = vector.broadcast %3 : vector<1x96xf32> to vector<8x96xf32>
      %93 = arith.addf %91, %92 : vector<8x96xf32>
      %94 = vector.extract_strided_slice %93 {offsets = [0, 0], sizes = [8, 48], strides = [1, 1]} : vector<8x96xf32> to vector<8x48xf32>
      %95 = vector.extract_strided_slice %90 {offsets = [0, 0], sizes = [8, 16], strides = [1, 1]} : vector<8x48xf32> to vector<8x16xf32>
      %96 = vector.extract_strided_slice %94 {offsets = [0, 0], sizes = [8, 16], strides = [1, 1]} : vector<8x48xf32> to vector<8x16xf32>
      %97 = arith.addf %95, %96 : vector<8x16xf32>
      %98 = arith.negf %97 : vector<8x16xf32>
      %99 = math.exp %98 : vector<8x16xf32>
      %cst_40 = arith.constant 1.000000e+00 : f32
      %100 = vector.broadcast %cst_40 : f32 to vector<8x16xf32>
      %101 = arith.addf %100, %99 : vector<8x16xf32>
      %102 = arith.divf %100, %101 : vector<8x16xf32>
      %103 = vector.extract_strided_slice %90 {offsets = [0, 16], sizes = [8, 16], strides = [1, 1]} : vector<8x48xf32> to vector<8x16xf32>
      %104 = vector.extract_strided_slice %94 {offsets = [0, 16], sizes = [8, 16], strides = [1, 1]} : vector<8x48xf32> to vector<8x16xf32>
      %105 = arith.addf %103, %104 : vector<8x16xf32>
      %106 = arith.negf %105 : vector<8x16xf32>
      %107 = math.exp %106 : vector<8x16xf32>
      %cst_41 = arith.constant 1.000000e+00 : f32
      %108 = vector.broadcast %cst_41 : f32 to vector<8x16xf32>
      %109 = arith.addf %108, %107 : vector<8x16xf32>
      %110 = arith.divf %108, %109 : vector<8x16xf32>
      %111 = vector.extract_strided_slice %90 {offsets = [0, 32], sizes = [8, 16], strides = [1, 1]} : vector<8x48xf32> to vector<8x16xf32>
      %112 = vector.extract_strided_slice %94 {offsets = [0, 32], sizes = [8, 16], strides = [1, 1]} : vector<8x48xf32> to vector<8x16xf32>
      %113 = arith.mulf %102, %112 : vector<8x16xf32>
      %114 = arith.addf %111, %113 : vector<8x16xf32>
      %115 = math.tanh %114 : vector<8x16xf32>
      %cst_42 = arith.constant 1.000000e+00 : f32
      %116 = vector.broadcast %cst_42 : f32 to vector<8x16xf32>
      %117 = arith.subf %116, %110 : vector<8x16xf32>
      %118 = arith.mulf %117, %115 : vector<8x16xf32>
      %119 = vector.extract_strided_slice %89 {offsets = [0, 0], sizes = [8, 16], strides = [1, 1]} : vector<8x32xf32> to vector<8x16xf32>
      %120 = arith.mulf %110, %119 : vector<8x16xf32>
      %121 = arith.addf %118, %120 : vector<8x16xf32>
      %122 = vector.extract_strided_slice %93 {offsets = [0, 48], sizes = [8, 48], strides = [1, 1]} : vector<8x96xf32> to vector<8x48xf32>
      %cst_43 = arith.constant dense<0.000000e+00> : vector<8x48xf32>
      %123 = tpu.matmul %121, %4, %cst_43 {dimension_numbers = #tpu.dot_dimension_numbers<[1], [0], [0], [1], [0, 0, 1, 1], [], []>} : vector<8x16xf32>, vector<16x48xf32>, vector<8x48xf32> -> vector<8x48xf32>
      %124 = vector.broadcast %5 : vector<1x48xf32> to vector<8x48xf32>
      %125 = arith.addf %123, %124 : vector<8x48xf32>
      %126 = vector.extract_strided_slice %125 {offsets = [0, 0], sizes = [8, 16], strides = [1, 1]} : vector<8x48xf32> to vector<8x16xf32>
      %127 = vector.extract_strided_slice %122 {offsets = [0, 0], sizes = [8, 16], strides = [1, 1]} : vector<8x48xf32> to vector<8x16xf32>
      %128 = arith.addf %126, %127 : vector<8x16xf32>
      %129 = arith.negf %128 : vector<8x16xf32>
      %130 = math.exp %129 : vector<8x16xf32>
      %cst_44 = arith.constant 1.000000e+00 : f32
      %131 = vector.broadcast %cst_44 : f32 to vector<8x16xf32>
      %132 = arith.addf %131, %130 : vector<8x16xf32>
      %133 = arith.divf %131, %132 : vector<8x16xf32>
      %134 = vector.extract_strided_slice %125 {offsets = [0, 16], sizes = [8, 16], strides = [1, 1]} : vector<8x48xf32> to vector<8x16xf32>
      %135 = vector.extract_strided_slice %122 {offsets = [0, 16], sizes = [8, 16], strides = [1, 1]} : vector<8x48xf32> to vector<8x16xf32>
      %136 = arith.addf %134, %135 : vector<8x16xf32>
      %137 = arith.negf %136 : vector<8x16xf32>
      %138 = math.exp %137 : vector<8x16xf32>
      %cst_45 = arith.constant 1.000000e+00 : f32
      %139 = vector.broadcast %cst_45 : f32 to vector<8x16xf32>
      %140 = arith.addf %139, %138 : vector<8x16xf32>
      %141 = arith.divf %139, %140 : vector<8x16xf32>
      %142 = vector.extract_strided_slice %125 {offsets = [0, 32], sizes = [8, 16], strides = [1, 1]} : vector<8x48xf32> to vector<8x16xf32>
      %143 = vector.extract_strided_slice %122 {offsets = [0, 32], sizes = [8, 16], strides = [1, 1]} : vector<8x48xf32> to vector<8x16xf32>
      %144 = arith.mulf %133, %143 : vector<8x16xf32>
      %145 = arith.addf %142, %144 : vector<8x16xf32>
      %146 = math.tanh %145 : vector<8x16xf32>
      %cst_46 = arith.constant 1.000000e+00 : f32
      %147 = vector.broadcast %cst_46 : f32 to vector<8x16xf32>
      %148 = arith.subf %147, %141 : vector<8x16xf32>
      %149 = arith.mulf %148, %146 : vector<8x16xf32>
      %150 = vector.extract_strided_slice %89 {offsets = [0, 16], sizes = [8, 16], strides = [1, 1]} : vector<8x32xf32> to vector<8x16xf32>
      %151 = arith.mulf %141, %150 : vector<8x16xf32>
      %152 = arith.addf %149, %151 : vector<8x16xf32>
      %153 = tpu.concatenate %121, %152 in 1 : vector<8x16xf32>, vector<8x16xf32> -> vector<8x32xf32>
      %154 = vector.extract_strided_slice %arg29 {offsets = [16, 0], sizes = [8, 48], strides = [1, 1]} : vector<56x48xf32> to vector<8x48xf32>
      %cst_47 = arith.constant dense<0.000000e+00> : vector<8x96xf32>
      %155 = tpu.matmul %153, %2, %cst_47 {dimension_numbers = #tpu.dot_dimension_numbers<[1], [0], [0], [1], [0, 0, 1, 1], [], []>} : vector<8x32xf32>, vector<32x96xf32>, vector<8x96xf32> -> vector<8x96xf32>
      %156 = vector.broadcast %3 : vector<1x96xf32> to vector<8x96xf32>
      %157 = arith.addf %155, %156 : vector<8x96xf32>
      %158 = vector.extract_strided_slice %157 {offsets = [0, 0], sizes = [8, 48], strides = [1, 1]} : vector<8x96xf32> to vector<8x48xf32>
      %159 = vector.extract_strided_slice %154 {offsets = [0, 0], sizes = [8, 16], strides = [1, 1]} : vector<8x48xf32> to vector<8x16xf32>
      %160 = vector.extract_strided_slice %158 {offsets = [0, 0], sizes = [8, 16], strides = [1, 1]} : vector<8x48xf32> to vector<8x16xf32>
      %161 = arith.addf %159, %160 : vector<8x16xf32>
      %162 = arith.negf %161 : vector<8x16xf32>
      %163 = math.exp %162 : vector<8x16xf32>
      %cst_48 = arith.constant 1.000000e+00 : f32
      %164 = vector.broadcast %cst_48 : f32 to vector<8x16xf32>
      %165 = arith.addf %164, %163 : vector<8x16xf32>
      %166 = arith.divf %164, %165 : vector<8x16xf32>
      %167 = vector.extract_strided_slice %154 {offsets = [0, 16], sizes = [8, 16], strides = [1, 1]} : vector<8x48xf32> to vector<8x16xf32>
      %168 = vector.extract_strided_slice %158 {offsets = [0, 16], sizes = [8, 16], strides = [1, 1]} : vector<8x48xf32> to vector<8x16xf32>
      %169 = arith.addf %167, %168 : vector<8x16xf32>
      %170 = arith.negf %169 : vector<8x16xf32>
      %171 = math.exp %170 : vector<8x16xf32>
      %cst_49 = arith.constant 1.000000e+00 : f32
      %172 = vector.broadcast %cst_49 : f32 to vector<8x16xf32>
      %173 = arith.addf %172, %171 : vector<8x16xf32>
      %174 = arith.divf %172, %173 : vector<8x16xf32>
      %175 = vector.extract_strided_slice %154 {offsets = [0, 32], sizes = [8, 16], strides = [1, 1]} : vector<8x48xf32> to vector<8x16xf32>
      %176 = vector.extract_strided_slice %158 {offsets = [0, 32], sizes = [8, 16], strides = [1, 1]} : vector<8x48xf32> to vector<8x16xf32>
      %177 = arith.mulf %166, %176 : vector<8x16xf32>
      %178 = arith.addf %175, %177 : vector<8x16xf32>
      %179 = math.tanh %178 : vector<8x16xf32>
      %cst_50 = arith.constant 1.000000e+00 : f32
      %180 = vector.broadcast %cst_50 : f32 to vector<8x16xf32>
      %181 = arith.subf %180, %174 : vector<8x16xf32>
      %182 = arith.mulf %181, %179 : vector<8x16xf32>
      %183 = vector.extract_strided_slice %153 {offsets = [0, 0], sizes = [8, 16], strides = [1, 1]} : vector<8x32xf32> to vector<8x16xf32>
      %184 = arith.mulf %174, %183 : vector<8x16xf32>
      %185 = arith.addf %182, %184 : vector<8x16xf32>
      %186 = vector.extract_strided_slice %157 {offsets = [0, 48], sizes = [8, 48], strides = [1, 1]} : vector<8x96xf32> to vector<8x48xf32>
      %cst_51 = arith.constant dense<0.000000e+00> : vector<8x48xf32>
      %187 = tpu.matmul %185, %4, %cst_51 {dimension_numbers = #tpu.dot_dimension_numbers<[1], [0], [0], [1], [0, 0, 1, 1], [], []>} : vector<8x16xf32>, vector<16x48xf32>, vector<8x48xf32> -> vector<8x48xf32>
      %188 = vector.broadcast %5 : vector<1x48xf32> to vector<8x48xf32>
      %189 = arith.addf %187, %188 : vector<8x48xf32>
      %190 = vector.extract_strided_slice %189 {offsets = [0, 0], sizes = [8, 16], strides = [1, 1]} : vector<8x48xf32> to vector<8x16xf32>
      %191 = vector.extract_strided_slice %186 {offsets = [0, 0], sizes = [8, 16], strides = [1, 1]} : vector<8x48xf32> to vector<8x16xf32>
      %192 = arith.addf %190, %191 : vector<8x16xf32>
      %193 = arith.negf %192 : vector<8x16xf32>
      %194 = math.exp %193 : vector<8x16xf32>
      %cst_52 = arith.constant 1.000000e+00 : f32
      %195 = vector.broadcast %cst_52 : f32 to vector<8x16xf32>
      %196 = arith.addf %195, %194 : vector<8x16xf32>
      %197 = arith.divf %195, %196 : vector<8x16xf32>
      %198 = vector.extract_strided_slice %189 {offsets = [0, 16], sizes = [8, 16], strides = [1, 1]} : vector<8x48xf32> to vector<8x16xf32>
      %199 = vector.extract_strided_slice %186 {offsets = [0, 16], sizes = [8, 16], strides = [1, 1]} : vector<8x48xf32> to vector<8x16xf32>
      %200 = arith.addf %198, %199 : vector<8x16xf32>
      %201 = arith.negf %200 : vector<8x16xf32>
      %202 = math.exp %201 : vector<8x16xf32>
      %cst_53 = arith.constant 1.000000e+00 : f32
      %203 = vector.broadcast %cst_53 : f32 to vector<8x16xf32>
      %204 = arith.addf %203, %202 : vector<8x16xf32>
      %205 = arith.divf %203, %204 : vector<8x16xf32>
      %206 = vector.extract_strided_slice %189 {offsets = [0, 32], sizes = [8, 16], strides = [1, 1]} : vector<8x48xf32> to vector<8x16xf32>
      %207 = vector.extract_strided_slice %186 {offsets = [0, 32], sizes = [8, 16], strides = [1, 1]} : vector<8x48xf32> to vector<8x16xf32>
      %208 = arith.mulf %197, %207 : vector<8x16xf32>
      %209 = arith.addf %206, %208 : vector<8x16xf32>
      %210 = math.tanh %209 : vector<8x16xf32>
      %cst_54 = arith.constant 1.000000e+00 : f32
      %211 = vector.broadcast %cst_54 : f32 to vector<8x16xf32>
      %212 = arith.subf %211, %205 : vector<8x16xf32>
      %213 = arith.mulf %212, %210 : vector<8x16xf32>
      %214 = vector.extract_strided_slice %153 {offsets = [0, 16], sizes = [8, 16], strides = [1, 1]} : vector<8x32xf32> to vector<8x16xf32>
      %215 = arith.mulf %205, %214 : vector<8x16xf32>
      %216 = arith.addf %213, %215 : vector<8x16xf32>
      %217 = tpu.concatenate %185, %216 in 1 : vector<8x16xf32>, vector<8x16xf32> -> vector<8x32xf32>
      %218 = vector.extract_strided_slice %arg29 {offsets = [24, 0], sizes = [8, 48], strides = [1, 1]} : vector<56x48xf32> to vector<8x48xf32>
      %cst_55 = arith.constant dense<0.000000e+00> : vector<8x96xf32>
      %219 = tpu.matmul %217, %2, %cst_55 {dimension_numbers = #tpu.dot_dimension_numbers<[1], [0], [0], [1], [0, 0, 1, 1], [], []>} : vector<8x32xf32>, vector<32x96xf32>, vector<8x96xf32> -> vector<8x96xf32>
      %220 = vector.broadcast %3 : vector<1x96xf32> to vector<8x96xf32>
      %221 = arith.addf %219, %220 : vector<8x96xf32>
      %222 = vector.extract_strided_slice %221 {offsets = [0, 0], sizes = [8, 48], strides = [1, 1]} : vector<8x96xf32> to vector<8x48xf32>
      %223 = vector.extract_strided_slice %218 {offsets = [0, 0], sizes = [8, 16], strides = [1, 1]} : vector<8x48xf32> to vector<8x16xf32>
      %224 = vector.extract_strided_slice %222 {offsets = [0, 0], sizes = [8, 16], strides = [1, 1]} : vector<8x48xf32> to vector<8x16xf32>
      %225 = arith.addf %223, %224 : vector<8x16xf32>
      %226 = arith.negf %225 : vector<8x16xf32>
      %227 = math.exp %226 : vector<8x16xf32>
      %cst_56 = arith.constant 1.000000e+00 : f32
      %228 = vector.broadcast %cst_56 : f32 to vector<8x16xf32>
      %229 = arith.addf %228, %227 : vector<8x16xf32>
      %230 = arith.divf %228, %229 : vector<8x16xf32>
      %231 = vector.extract_strided_slice %218 {offsets = [0, 16], sizes = [8, 16], strides = [1, 1]} : vector<8x48xf32> to vector<8x16xf32>
      %232 = vector.extract_strided_slice %222 {offsets = [0, 16], sizes = [8, 16], strides = [1, 1]} : vector<8x48xf32> to vector<8x16xf32>
      %233 = arith.addf %231, %232 : vector<8x16xf32>
      %234 = arith.negf %233 : vector<8x16xf32>
      %235 = math.exp %234 : vector<8x16xf32>
      %cst_57 = arith.constant 1.000000e+00 : f32
      %236 = vector.broadcast %cst_57 : f32 to vector<8x16xf32>
      %237 = arith.addf %236, %235 : vector<8x16xf32>
      %238 = arith.divf %236, %237 : vector<8x16xf32>
      %239 = vector.extract_strided_slice %218 {offsets = [0, 32], sizes = [8, 16], strides = [1, 1]} : vector<8x48xf32> to vector<8x16xf32>
      %240 = vector.extract_strided_slice %222 {offsets = [0, 32], sizes = [8, 16], strides = [1, 1]} : vector<8x48xf32> to vector<8x16xf32>
      %241 = arith.mulf %230, %240 : vector<8x16xf32>
      %242 = arith.addf %239, %241 : vector<8x16xf32>
      %243 = math.tanh %242 : vector<8x16xf32>
      %cst_58 = arith.constant 1.000000e+00 : f32
      %244 = vector.broadcast %cst_58 : f32 to vector<8x16xf32>
      %245 = arith.subf %244, %238 : vector<8x16xf32>
      %246 = arith.mulf %245, %243 : vector<8x16xf32>
      %247 = vector.extract_strided_slice %217 {offsets = [0, 0], sizes = [8, 16], strides = [1, 1]} : vector<8x32xf32> to vector<8x16xf32>
      %248 = arith.mulf %238, %247 : vector<8x16xf32>
      %249 = arith.addf %246, %248 : vector<8x16xf32>
      %250 = vector.extract_strided_slice %221 {offsets = [0, 48], sizes = [8, 48], strides = [1, 1]} : vector<8x96xf32> to vector<8x48xf32>
      %cst_59 = arith.constant dense<0.000000e+00> : vector<8x48xf32>
      %251 = tpu.matmul %249, %4, %cst_59 {dimension_numbers = #tpu.dot_dimension_numbers<[1], [0], [0], [1], [0, 0, 1, 1], [], []>} : vector<8x16xf32>, vector<16x48xf32>, vector<8x48xf32> -> vector<8x48xf32>
      %252 = vector.broadcast %5 : vector<1x48xf32> to vector<8x48xf32>
      %253 = arith.addf %251, %252 : vector<8x48xf32>
      %254 = vector.extract_strided_slice %253 {offsets = [0, 0], sizes = [8, 16], strides = [1, 1]} : vector<8x48xf32> to vector<8x16xf32>
      %255 = vector.extract_strided_slice %250 {offsets = [0, 0], sizes = [8, 16], strides = [1, 1]} : vector<8x48xf32> to vector<8x16xf32>
      %256 = arith.addf %254, %255 : vector<8x16xf32>
      %257 = arith.negf %256 : vector<8x16xf32>
      %258 = math.exp %257 : vector<8x16xf32>
      %cst_60 = arith.constant 1.000000e+00 : f32
      %259 = vector.broadcast %cst_60 : f32 to vector<8x16xf32>
      %260 = arith.addf %259, %258 : vector<8x16xf32>
      %261 = arith.divf %259, %260 : vector<8x16xf32>
      %262 = vector.extract_strided_slice %253 {offsets = [0, 16], sizes = [8, 16], strides = [1, 1]} : vector<8x48xf32> to vector<8x16xf32>
      %263 = vector.extract_strided_slice %250 {offsets = [0, 16], sizes = [8, 16], strides = [1, 1]} : vector<8x48xf32> to vector<8x16xf32>
      %264 = arith.addf %262, %263 : vector<8x16xf32>
      %265 = arith.negf %264 : vector<8x16xf32>
      %266 = math.exp %265 : vector<8x16xf32>
      %cst_61 = arith.constant 1.000000e+00 : f32
      %267 = vector.broadcast %cst_61 : f32 to vector<8x16xf32>
      %268 = arith.addf %267, %266 : vector<8x16xf32>
      %269 = arith.divf %267, %268 : vector<8x16xf32>
      %270 = vector.extract_strided_slice %253 {offsets = [0, 32], sizes = [8, 16], strides = [1, 1]} : vector<8x48xf32> to vector<8x16xf32>
      %271 = vector.extract_strided_slice %250 {offsets = [0, 32], sizes = [8, 16], strides = [1, 1]} : vector<8x48xf32> to vector<8x16xf32>
      %272 = arith.mulf %261, %271 : vector<8x16xf32>
      %273 = arith.addf %270, %272 : vector<8x16xf32>
      %274 = math.tanh %273 : vector<8x16xf32>
      %cst_62 = arith.constant 1.000000e+00 : f32
      %275 = vector.broadcast %cst_62 : f32 to vector<8x16xf32>
      %276 = arith.subf %275, %269 : vector<8x16xf32>
      %277 = arith.mulf %276, %274 : vector<8x16xf32>
      %278 = vector.extract_strided_slice %217 {offsets = [0, 16], sizes = [8, 16], strides = [1, 1]} : vector<8x32xf32> to vector<8x16xf32>
      %279 = arith.mulf %269, %278 : vector<8x16xf32>
      %280 = arith.addf %277, %279 : vector<8x16xf32>
      %281 = tpu.concatenate %249, %280 in 1 : vector<8x16xf32>, vector<8x16xf32> -> vector<8x32xf32>
      %282 = vector.extract_strided_slice %arg29 {offsets = [32, 0], sizes = [8, 48], strides = [1, 1]} : vector<56x48xf32> to vector<8x48xf32>
      %cst_63 = arith.constant dense<0.000000e+00> : vector<8x96xf32>
      %283 = tpu.matmul %281, %2, %cst_63 {dimension_numbers = #tpu.dot_dimension_numbers<[1], [0], [0], [1], [0, 0, 1, 1], [], []>} : vector<8x32xf32>, vector<32x96xf32>, vector<8x96xf32> -> vector<8x96xf32>
      %284 = vector.broadcast %3 : vector<1x96xf32> to vector<8x96xf32>
      %285 = arith.addf %283, %284 : vector<8x96xf32>
      %286 = vector.extract_strided_slice %285 {offsets = [0, 0], sizes = [8, 48], strides = [1, 1]} : vector<8x96xf32> to vector<8x48xf32>
      %287 = vector.extract_strided_slice %282 {offsets = [0, 0], sizes = [8, 16], strides = [1, 1]} : vector<8x48xf32> to vector<8x16xf32>
      %288 = vector.extract_strided_slice %286 {offsets = [0, 0], sizes = [8, 16], strides = [1, 1]} : vector<8x48xf32> to vector<8x16xf32>
      %289 = arith.addf %287, %288 : vector<8x16xf32>
      %290 = arith.negf %289 : vector<8x16xf32>
      %291 = math.exp %290 : vector<8x16xf32>
      %cst_64 = arith.constant 1.000000e+00 : f32
      %292 = vector.broadcast %cst_64 : f32 to vector<8x16xf32>
      %293 = arith.addf %292, %291 : vector<8x16xf32>
      %294 = arith.divf %292, %293 : vector<8x16xf32>
      %295 = vector.extract_strided_slice %282 {offsets = [0, 16], sizes = [8, 16], strides = [1, 1]} : vector<8x48xf32> to vector<8x16xf32>
      %296 = vector.extract_strided_slice %286 {offsets = [0, 16], sizes = [8, 16], strides = [1, 1]} : vector<8x48xf32> to vector<8x16xf32>
      %297 = arith.addf %295, %296 : vector<8x16xf32>
      %298 = arith.negf %297 : vector<8x16xf32>
      %299 = math.exp %298 : vector<8x16xf32>
      %cst_65 = arith.constant 1.000000e+00 : f32
      %300 = vector.broadcast %cst_65 : f32 to vector<8x16xf32>
      %301 = arith.addf %300, %299 : vector<8x16xf32>
      %302 = arith.divf %300, %301 : vector<8x16xf32>
      %303 = vector.extract_strided_slice %282 {offsets = [0, 32], sizes = [8, 16], strides = [1, 1]} : vector<8x48xf32> to vector<8x16xf32>
      %304 = vector.extract_strided_slice %286 {offsets = [0, 32], sizes = [8, 16], strides = [1, 1]} : vector<8x48xf32> to vector<8x16xf32>
      %305 = arith.mulf %294, %304 : vector<8x16xf32>
      %306 = arith.addf %303, %305 : vector<8x16xf32>
      %307 = math.tanh %306 : vector<8x16xf32>
      %cst_66 = arith.constant 1.000000e+00 : f32
      %308 = vector.broadcast %cst_66 : f32 to vector<8x16xf32>
      %309 = arith.subf %308, %302 : vector<8x16xf32>
      %310 = arith.mulf %309, %307 : vector<8x16xf32>
      %311 = vector.extract_strided_slice %281 {offsets = [0, 0], sizes = [8, 16], strides = [1, 1]} : vector<8x32xf32> to vector<8x16xf32>
      %312 = arith.mulf %302, %311 : vector<8x16xf32>
      %313 = arith.addf %310, %312 : vector<8x16xf32>
      %314 = vector.extract_strided_slice %285 {offsets = [0, 48], sizes = [8, 48], strides = [1, 1]} : vector<8x96xf32> to vector<8x48xf32>
      %cst_67 = arith.constant dense<0.000000e+00> : vector<8x48xf32>
      %315 = tpu.matmul %313, %4, %cst_67 {dimension_numbers = #tpu.dot_dimension_numbers<[1], [0], [0], [1], [0, 0, 1, 1], [], []>} : vector<8x16xf32>, vector<16x48xf32>, vector<8x48xf32> -> vector<8x48xf32>
      %316 = vector.broadcast %5 : vector<1x48xf32> to vector<8x48xf32>
      %317 = arith.addf %315, %316 : vector<8x48xf32>
      %318 = vector.extract_strided_slice %317 {offsets = [0, 0], sizes = [8, 16], strides = [1, 1]} : vector<8x48xf32> to vector<8x16xf32>
      %319 = vector.extract_strided_slice %314 {offsets = [0, 0], sizes = [8, 16], strides = [1, 1]} : vector<8x48xf32> to vector<8x16xf32>
      %320 = arith.addf %318, %319 : vector<8x16xf32>
      %321 = arith.negf %320 : vector<8x16xf32>
      %322 = math.exp %321 : vector<8x16xf32>
      %cst_68 = arith.constant 1.000000e+00 : f32
      %323 = vector.broadcast %cst_68 : f32 to vector<8x16xf32>
      %324 = arith.addf %323, %322 : vector<8x16xf32>
      %325 = arith.divf %323, %324 : vector<8x16xf32>
      %326 = vector.extract_strided_slice %317 {offsets = [0, 16], sizes = [8, 16], strides = [1, 1]} : vector<8x48xf32> to vector<8x16xf32>
      %327 = vector.extract_strided_slice %314 {offsets = [0, 16], sizes = [8, 16], strides = [1, 1]} : vector<8x48xf32> to vector<8x16xf32>
      %328 = arith.addf %326, %327 : vector<8x16xf32>
      %329 = arith.negf %328 : vector<8x16xf32>
      %330 = math.exp %329 : vector<8x16xf32>
      %cst_69 = arith.constant 1.000000e+00 : f32
      %331 = vector.broadcast %cst_69 : f32 to vector<8x16xf32>
      %332 = arith.addf %331, %330 : vector<8x16xf32>
      %333 = arith.divf %331, %332 : vector<8x16xf32>
      %334 = vector.extract_strided_slice %317 {offsets = [0, 32], sizes = [8, 16], strides = [1, 1]} : vector<8x48xf32> to vector<8x16xf32>
      %335 = vector.extract_strided_slice %314 {offsets = [0, 32], sizes = [8, 16], strides = [1, 1]} : vector<8x48xf32> to vector<8x16xf32>
      %336 = arith.mulf %325, %335 : vector<8x16xf32>
      %337 = arith.addf %334, %336 : vector<8x16xf32>
      %338 = math.tanh %337 : vector<8x16xf32>
      %cst_70 = arith.constant 1.000000e+00 : f32
      %339 = vector.broadcast %cst_70 : f32 to vector<8x16xf32>
      %340 = arith.subf %339, %333 : vector<8x16xf32>
      %341 = arith.mulf %340, %338 : vector<8x16xf32>
      %342 = vector.extract_strided_slice %281 {offsets = [0, 16], sizes = [8, 16], strides = [1, 1]} : vector<8x32xf32> to vector<8x16xf32>
      %343 = arith.mulf %333, %342 : vector<8x16xf32>
      %344 = arith.addf %341, %343 : vector<8x16xf32>
      %345 = tpu.concatenate %313, %344 in 1 : vector<8x16xf32>, vector<8x16xf32> -> vector<8x32xf32>
      %346 = vector.extract_strided_slice %arg29 {offsets = [40, 0], sizes = [8, 48], strides = [1, 1]} : vector<56x48xf32> to vector<8x48xf32>
      %cst_71 = arith.constant dense<0.000000e+00> : vector<8x96xf32>
      %347 = tpu.matmul %345, %2, %cst_71 {dimension_numbers = #tpu.dot_dimension_numbers<[1], [0], [0], [1], [0, 0, 1, 1], [], []>} : vector<8x32xf32>, vector<32x96xf32>, vector<8x96xf32> -> vector<8x96xf32>
      %348 = vector.broadcast %3 : vector<1x96xf32> to vector<8x96xf32>
      %349 = arith.addf %347, %348 : vector<8x96xf32>
      %350 = vector.extract_strided_slice %349 {offsets = [0, 0], sizes = [8, 48], strides = [1, 1]} : vector<8x96xf32> to vector<8x48xf32>
      %351 = vector.extract_strided_slice %346 {offsets = [0, 0], sizes = [8, 16], strides = [1, 1]} : vector<8x48xf32> to vector<8x16xf32>
      %352 = vector.extract_strided_slice %350 {offsets = [0, 0], sizes = [8, 16], strides = [1, 1]} : vector<8x48xf32> to vector<8x16xf32>
      %353 = arith.addf %351, %352 : vector<8x16xf32>
      %354 = arith.negf %353 : vector<8x16xf32>
      %355 = math.exp %354 : vector<8x16xf32>
      %cst_72 = arith.constant 1.000000e+00 : f32
      %356 = vector.broadcast %cst_72 : f32 to vector<8x16xf32>
      %357 = arith.addf %356, %355 : vector<8x16xf32>
      %358 = arith.divf %356, %357 : vector<8x16xf32>
      %359 = vector.extract_strided_slice %346 {offsets = [0, 16], sizes = [8, 16], strides = [1, 1]} : vector<8x48xf32> to vector<8x16xf32>
      %360 = vector.extract_strided_slice %350 {offsets = [0, 16], sizes = [8, 16], strides = [1, 1]} : vector<8x48xf32> to vector<8x16xf32>
      %361 = arith.addf %359, %360 : vector<8x16xf32>
      %362 = arith.negf %361 : vector<8x16xf32>
      %363 = math.exp %362 : vector<8x16xf32>
      %cst_73 = arith.constant 1.000000e+00 : f32
      %364 = vector.broadcast %cst_73 : f32 to vector<8x16xf32>
      %365 = arith.addf %364, %363 : vector<8x16xf32>
      %366 = arith.divf %364, %365 : vector<8x16xf32>
      %367 = vector.extract_strided_slice %346 {offsets = [0, 32], sizes = [8, 16], strides = [1, 1]} : vector<8x48xf32> to vector<8x16xf32>
      %368 = vector.extract_strided_slice %350 {offsets = [0, 32], sizes = [8, 16], strides = [1, 1]} : vector<8x48xf32> to vector<8x16xf32>
      %369 = arith.mulf %358, %368 : vector<8x16xf32>
      %370 = arith.addf %367, %369 : vector<8x16xf32>
      %371 = math.tanh %370 : vector<8x16xf32>
      %cst_74 = arith.constant 1.000000e+00 : f32
      %372 = vector.broadcast %cst_74 : f32 to vector<8x16xf32>
      %373 = arith.subf %372, %366 : vector<8x16xf32>
      %374 = arith.mulf %373, %371 : vector<8x16xf32>
      %375 = vector.extract_strided_slice %345 {offsets = [0, 0], sizes = [8, 16], strides = [1, 1]} : vector<8x32xf32> to vector<8x16xf32>
      %376 = arith.mulf %366, %375 : vector<8x16xf32>
      %377 = arith.addf %374, %376 : vector<8x16xf32>
      %378 = vector.extract_strided_slice %349 {offsets = [0, 48], sizes = [8, 48], strides = [1, 1]} : vector<8x96xf32> to vector<8x48xf32>
      %cst_75 = arith.constant dense<0.000000e+00> : vector<8x48xf32>
      %379 = tpu.matmul %377, %4, %cst_75 {dimension_numbers = #tpu.dot_dimension_numbers<[1], [0], [0], [1], [0, 0, 1, 1], [], []>} : vector<8x16xf32>, vector<16x48xf32>, vector<8x48xf32> -> vector<8x48xf32>
      %380 = vector.broadcast %5 : vector<1x48xf32> to vector<8x48xf32>
      %381 = arith.addf %379, %380 : vector<8x48xf32>
      %382 = vector.extract_strided_slice %381 {offsets = [0, 0], sizes = [8, 16], strides = [1, 1]} : vector<8x48xf32> to vector<8x16xf32>
      %383 = vector.extract_strided_slice %378 {offsets = [0, 0], sizes = [8, 16], strides = [1, 1]} : vector<8x48xf32> to vector<8x16xf32>
      %384 = arith.addf %382, %383 : vector<8x16xf32>
      %385 = arith.negf %384 : vector<8x16xf32>
      %386 = math.exp %385 : vector<8x16xf32>
      %cst_76 = arith.constant 1.000000e+00 : f32
      %387 = vector.broadcast %cst_76 : f32 to vector<8x16xf32>
      %388 = arith.addf %387, %386 : vector<8x16xf32>
      %389 = arith.divf %387, %388 : vector<8x16xf32>
      %390 = vector.extract_strided_slice %381 {offsets = [0, 16], sizes = [8, 16], strides = [1, 1]} : vector<8x48xf32> to vector<8x16xf32>
      %391 = vector.extract_strided_slice %378 {offsets = [0, 16], sizes = [8, 16], strides = [1, 1]} : vector<8x48xf32> to vector<8x16xf32>
      %392 = arith.addf %390, %391 : vector<8x16xf32>
      %393 = arith.negf %392 : vector<8x16xf32>
      %394 = math.exp %393 : vector<8x16xf32>
      %cst_77 = arith.constant 1.000000e+00 : f32
      %395 = vector.broadcast %cst_77 : f32 to vector<8x16xf32>
      %396 = arith.addf %395, %394 : vector<8x16xf32>
      %397 = arith.divf %395, %396 : vector<8x16xf32>
      %398 = vector.extract_strided_slice %381 {offsets = [0, 32], sizes = [8, 16], strides = [1, 1]} : vector<8x48xf32> to vector<8x16xf32>
      %399 = vector.extract_strided_slice %378 {offsets = [0, 32], sizes = [8, 16], strides = [1, 1]} : vector<8x48xf32> to vector<8x16xf32>
      %400 = arith.mulf %389, %399 : vector<8x16xf32>
      %401 = arith.addf %398, %400 : vector<8x16xf32>
      %402 = math.tanh %401 : vector<8x16xf32>
      %cst_78 = arith.constant 1.000000e+00 : f32
      %403 = vector.broadcast %cst_78 : f32 to vector<8x16xf32>
      %404 = arith.subf %403, %397 : vector<8x16xf32>
      %405 = arith.mulf %404, %402 : vector<8x16xf32>
      %406 = vector.extract_strided_slice %345 {offsets = [0, 16], sizes = [8, 16], strides = [1, 1]} : vector<8x32xf32> to vector<8x16xf32>
      %407 = arith.mulf %397, %406 : vector<8x16xf32>
      %408 = arith.addf %405, %407 : vector<8x16xf32>
      %409 = tpu.concatenate %377, %408 in 1 : vector<8x16xf32>, vector<8x16xf32> -> vector<8x32xf32>
      %410 = vector.extract_strided_slice %arg29 {offsets = [48, 0], sizes = [8, 48], strides = [1, 1]} : vector<56x48xf32> to vector<8x48xf32>
      %cst_79 = arith.constant dense<0.000000e+00> : vector<8x96xf32>
      %411 = tpu.matmul %409, %2, %cst_79 {dimension_numbers = #tpu.dot_dimension_numbers<[1], [0], [0], [1], [0, 0, 1, 1], [], []>} : vector<8x32xf32>, vector<32x96xf32>, vector<8x96xf32> -> vector<8x96xf32>
      %412 = vector.broadcast %3 : vector<1x96xf32> to vector<8x96xf32>
      %413 = arith.addf %411, %412 : vector<8x96xf32>
      %414 = vector.extract_strided_slice %413 {offsets = [0, 0], sizes = [8, 48], strides = [1, 1]} : vector<8x96xf32> to vector<8x48xf32>
      %415 = vector.extract_strided_slice %410 {offsets = [0, 0], sizes = [8, 16], strides = [1, 1]} : vector<8x48xf32> to vector<8x16xf32>
      %416 = vector.extract_strided_slice %414 {offsets = [0, 0], sizes = [8, 16], strides = [1, 1]} : vector<8x48xf32> to vector<8x16xf32>
      %417 = arith.addf %415, %416 : vector<8x16xf32>
      %418 = arith.negf %417 : vector<8x16xf32>
      %419 = math.exp %418 : vector<8x16xf32>
      %cst_80 = arith.constant 1.000000e+00 : f32
      %420 = vector.broadcast %cst_80 : f32 to vector<8x16xf32>
      %421 = arith.addf %420, %419 : vector<8x16xf32>
      %422 = arith.divf %420, %421 : vector<8x16xf32>
      %423 = vector.extract_strided_slice %410 {offsets = [0, 16], sizes = [8, 16], strides = [1, 1]} : vector<8x48xf32> to vector<8x16xf32>
      %424 = vector.extract_strided_slice %414 {offsets = [0, 16], sizes = [8, 16], strides = [1, 1]} : vector<8x48xf32> to vector<8x16xf32>
      %425 = arith.addf %423, %424 : vector<8x16xf32>
      %426 = arith.negf %425 : vector<8x16xf32>
      %427 = math.exp %426 : vector<8x16xf32>
      %cst_81 = arith.constant 1.000000e+00 : f32
      %428 = vector.broadcast %cst_81 : f32 to vector<8x16xf32>
      %429 = arith.addf %428, %427 : vector<8x16xf32>
      %430 = arith.divf %428, %429 : vector<8x16xf32>
      %431 = vector.extract_strided_slice %410 {offsets = [0, 32], sizes = [8, 16], strides = [1, 1]} : vector<8x48xf32> to vector<8x16xf32>
      %432 = vector.extract_strided_slice %414 {offsets = [0, 32], sizes = [8, 16], strides = [1, 1]} : vector<8x48xf32> to vector<8x16xf32>
      %433 = arith.mulf %422, %432 : vector<8x16xf32>
      %434 = arith.addf %431, %433 : vector<8x16xf32>
      %435 = math.tanh %434 : vector<8x16xf32>
      %cst_82 = arith.constant 1.000000e+00 : f32
      %436 = vector.broadcast %cst_82 : f32 to vector<8x16xf32>
      %437 = arith.subf %436, %430 : vector<8x16xf32>
      %438 = arith.mulf %437, %435 : vector<8x16xf32>
      %439 = vector.extract_strided_slice %409 {offsets = [0, 0], sizes = [8, 16], strides = [1, 1]} : vector<8x32xf32> to vector<8x16xf32>
      %440 = arith.mulf %430, %439 : vector<8x16xf32>
      %441 = arith.addf %438, %440 : vector<8x16xf32>
      %442 = vector.extract_strided_slice %413 {offsets = [0, 48], sizes = [8, 48], strides = [1, 1]} : vector<8x96xf32> to vector<8x48xf32>
      %cst_83 = arith.constant dense<0.000000e+00> : vector<8x48xf32>
      %443 = tpu.matmul %441, %4, %cst_83 {dimension_numbers = #tpu.dot_dimension_numbers<[1], [0], [0], [1], [0, 0, 1, 1], [], []>} : vector<8x16xf32>, vector<16x48xf32>, vector<8x48xf32> -> vector<8x48xf32>
      %444 = vector.broadcast %5 : vector<1x48xf32> to vector<8x48xf32>
      %445 = arith.addf %443, %444 : vector<8x48xf32>
      %446 = vector.extract_strided_slice %445 {offsets = [0, 0], sizes = [8, 16], strides = [1, 1]} : vector<8x48xf32> to vector<8x16xf32>
      %447 = vector.extract_strided_slice %442 {offsets = [0, 0], sizes = [8, 16], strides = [1, 1]} : vector<8x48xf32> to vector<8x16xf32>
      %448 = arith.addf %446, %447 : vector<8x16xf32>
      %449 = arith.negf %448 : vector<8x16xf32>
      %450 = math.exp %449 : vector<8x16xf32>
      %cst_84 = arith.constant 1.000000e+00 : f32
      %451 = vector.broadcast %cst_84 : f32 to vector<8x16xf32>
      %452 = arith.addf %451, %450 : vector<8x16xf32>
      %453 = arith.divf %451, %452 : vector<8x16xf32>
      %454 = vector.extract_strided_slice %445 {offsets = [0, 16], sizes = [8, 16], strides = [1, 1]} : vector<8x48xf32> to vector<8x16xf32>
      %455 = vector.extract_strided_slice %442 {offsets = [0, 16], sizes = [8, 16], strides = [1, 1]} : vector<8x48xf32> to vector<8x16xf32>
      %456 = arith.addf %454, %455 : vector<8x16xf32>
      %457 = arith.negf %456 : vector<8x16xf32>
      %458 = math.exp %457 : vector<8x16xf32>
      %cst_85 = arith.constant 1.000000e+00 : f32
      %459 = vector.broadcast %cst_85 : f32 to vector<8x16xf32>
      %460 = arith.addf %459, %458 : vector<8x16xf32>
      %461 = arith.divf %459, %460 : vector<8x16xf32>
      %462 = vector.extract_strided_slice %445 {offsets = [0, 32], sizes = [8, 16], strides = [1, 1]} : vector<8x48xf32> to vector<8x16xf32>
      %463 = vector.extract_strided_slice %442 {offsets = [0, 32], sizes = [8, 16], strides = [1, 1]} : vector<8x48xf32> to vector<8x16xf32>
      %464 = arith.mulf %453, %463 : vector<8x16xf32>
      %465 = arith.addf %462, %464 : vector<8x16xf32>
      %466 = math.tanh %465 : vector<8x16xf32>
      %cst_86 = arith.constant 1.000000e+00 : f32
      %467 = vector.broadcast %cst_86 : f32 to vector<8x16xf32>
      %468 = arith.subf %467, %461 : vector<8x16xf32>
      %469 = arith.mulf %468, %466 : vector<8x16xf32>
      %470 = vector.extract_strided_slice %409 {offsets = [0, 16], sizes = [8, 16], strides = [1, 1]} : vector<8x32xf32> to vector<8x16xf32>
      %471 = arith.mulf %461, %470 : vector<8x16xf32>
      %472 = arith.addf %469, %471 : vector<8x16xf32>
      %473 = tpu.concatenate %441, %472 in 1 : vector<8x16xf32>, vector<8x16xf32> -> vector<8x32xf32>
      %474 = vector.extract_strided_slice %473 {offsets = [0, 16], sizes = [8, 16], strides = [1, 1]} : vector<8x32xf32> to vector<8x16xf32>
      %cst_87 = arith.constant dense<0.000000e+00> : vector<8x8xf32>
      %475 = tpu.matmul %474, %6, %cst_87 {dimension_numbers = #tpu.dot_dimension_numbers<[1], [0], [0], [1], [0, 0, 1, 1], [], []>} : vector<8x16xf32>, vector<16x8xf32>, vector<8x8xf32> -> vector<8x8xf32>
      %476 = vector.broadcast %7 : vector<1x8xf32> to vector<8x8xf32>
      %477 = arith.addf %475, %476 : vector<8x8xf32>
      %cst_88 = arith.constant dense<0.000000e+00> : vector<8x64xf32>
      %478 = tpu.matmul %477, %8, %cst_88 {dimension_numbers = #tpu.dot_dimension_numbers<[1], [0], [0], [1], [0, 0, 1, 1], [], []>} : vector<8x8xf32>, vector<8x64xf32>, vector<8x64xf32> -> vector<8x64xf32>
      %479 = arith.mulf %478, %9 : vector<8x64xf32>
      %cst_89 = arith.constant dense<0.000000e+00> : vector<64xf32>
      %480 = vector.multi_reduction <add>, %479, %cst_89 [0] : vector<8x64xf32> to vector<64xf32>
      %481 = vector.shape_cast %480 : vector<64xf32> to vector<1x64xf32>
      %482 = tpu.concatenate %arg28, %481 in 0 : vector<7x64xf32>, vector<1x64xf32> -> vector<8x64xf32>
      %c0_90 = arith.constant 0 : index
      %c0_91 = arith.constant 0 : index
      %483 = vector.load %arg22[%c0_90, %c0_91] : memref<64x64xf32, #tpu.memory_space<vmem>>, vector<64x64xf32>
      %c0_92 = arith.constant 0 : index
      %c0_93 = arith.constant 0 : index
      %484 = vector.load %arg11[%c0_92, %c0_93] : memref<8x8xf32, #tpu.memory_space<vmem>>, vector<8x8xf32>
      %cst_94 = arith.constant dense<0.000000e+00> : vector<8x64xf32>
      %485 = tpu.matmul %484, %482, %cst_94 {dimension_numbers = #tpu.dot_dimension_numbers<[1], [0], [0], [1], [0, 0, 1, 1], [], []>} : vector<8x8xf32>, vector<8x64xf32>, vector<8x64xf32> -> vector<8x64xf32>
      %c0_95 = arith.constant 0 : index
      %c0_96 = arith.constant 0 : index
      %486 = vector.load %arg12[%c0_95, %c0_96] : memref<8x64xf32, #tpu.memory_space<vmem>>, vector<8x64xf32>
      %487 = arith.addf %485, %486 : vector<8x64xf32>
      %cst_97 = arith.constant dense<0.000000e+00> : vector<8x64xf32>
      %488 = tpu.matmul %487, %483, %cst_97 {dimension_numbers = #tpu.dot_dimension_numbers<[1], [0], [0], [1], [0, 0, 1, 1], [], []>} : vector<8x64xf32>, vector<64x64xf32>, vector<8x64xf32> -> vector<8x64xf32>
      %489 = arith.subf %487, %488 : vector<8x64xf32>
      %490 = arith.mulf %489, %489 : vector<8x64xf32>
      %cst_98 = arith.constant dense<0.000000e+00> : vector<8x64xf32>
      %491 = tpu.matmul %490, %483, %cst_98 {dimension_numbers = #tpu.dot_dimension_numbers<[1], [0], [0], [1], [0, 0, 1, 1], [], []>} : vector<8x64xf32>, vector<64x64xf32>, vector<8x64xf32> -> vector<8x64xf32>
      %cst_99 = arith.constant 9.99999974E-6 : f32
      %492 = vector.broadcast %cst_99 : f32 to vector<8x64xf32>
      %493 = arith.addf %491, %492 : vector<8x64xf32>
      %494 = math.rsqrt %493 : vector<8x64xf32>
      %495 = arith.mulf %489, %494 : vector<8x64xf32>
      %c0_100 = arith.constant 0 : index
      %c0_101 = arith.constant 0 : index
      %496 = vector.load %arg13[%c0_100, %c0_101] : memref<1x64xf32, #tpu.memory_space<vmem>>, vector<1x64xf32>
      %497 = vector.broadcast %496 : vector<1x64xf32> to vector<8x64xf32>
      %498 = arith.mulf %495, %497 : vector<8x64xf32>
      %499 = arith.addf %482, %498 : vector<8x64xf32>
      %c0_102 = arith.constant 0 : index
      %c0_103 = arith.constant 0 : index
      %500 = vector.load %arg14[%c0_102, %c0_103] : memref<1x64xf32, #tpu.memory_space<vmem>>, vector<1x64xf32>
      %501 = vector.broadcast %500 : vector<1x64xf32> to vector<8x64xf32>
      %502 = arith.addf %499, %501 : vector<8x64xf32>
      %c0_104 = arith.constant 0 : index
      %c0_105 = arith.constant 0 : index
      %503 = vector.load %arg15[%c0_104, %c0_105] : memref<8x8xf32, #tpu.memory_space<vmem>>, vector<8x8xf32>
      %cst_106 = arith.constant dense<0.000000e+00> : vector<8x64xf32>
      %504 = tpu.matmul %503, %502, %cst_106 {dimension_numbers = #tpu.dot_dimension_numbers<[1], [0], [0], [1], [0, 0, 1, 1], [], []>} : vector<8x8xf32>, vector<8x64xf32>, vector<8x64xf32> -> vector<8x64xf32>
      %c0_107 = arith.constant 0 : index
      %c0_108 = arith.constant 0 : index
      %505 = vector.load %arg16[%c0_107, %c0_108] : memref<8x64xf32, #tpu.memory_space<vmem>>, vector<8x64xf32>
      %506 = arith.addf %504, %505 : vector<8x64xf32>
      %cst_109 = arith.constant dense<0.000000e+00> : vector<8x64xf32>
      %507 = tpu.matmul %506, %483, %cst_109 {dimension_numbers = #tpu.dot_dimension_numbers<[1], [0], [0], [1], [0, 0, 1, 1], [], []>} : vector<8x64xf32>, vector<64x64xf32>, vector<8x64xf32> -> vector<8x64xf32>
      %508 = arith.subf %506, %507 : vector<8x64xf32>
      %509 = arith.mulf %508, %508 : vector<8x64xf32>
      %cst_110 = arith.constant dense<0.000000e+00> : vector<8x64xf32>
      %510 = tpu.matmul %509, %483, %cst_110 {dimension_numbers = #tpu.dot_dimension_numbers<[1], [0], [0], [1], [0, 0, 1, 1], [], []>} : vector<8x64xf32>, vector<64x64xf32>, vector<8x64xf32> -> vector<8x64xf32>
      %cst_111 = arith.constant 9.99999974E-6 : f32
      %511 = vector.broadcast %cst_111 : f32 to vector<8x64xf32>
      %512 = arith.addf %510, %511 : vector<8x64xf32>
      %513 = math.rsqrt %512 : vector<8x64xf32>
      %514 = arith.mulf %508, %513 : vector<8x64xf32>
      %c0_112 = arith.constant 0 : index
      %c0_113 = arith.constant 0 : index
      %515 = vector.load %arg17[%c0_112, %c0_113] : memref<1x64xf32, #tpu.memory_space<vmem>>, vector<1x64xf32>
      %516 = vector.broadcast %515 : vector<1x64xf32> to vector<8x64xf32>
      %517 = arith.mulf %514, %516 : vector<8x64xf32>
      %518 = arith.addf %502, %517 : vector<8x64xf32>
      %c0_114 = arith.constant 0 : index
      %c0_115 = arith.constant 0 : index
      %519 = vector.load %arg18[%c0_114, %c0_115] : memref<1x64xf32, #tpu.memory_space<vmem>>, vector<1x64xf32>
      %520 = vector.broadcast %519 : vector<1x64xf32> to vector<8x64xf32>
      %521 = arith.addf %518, %520 : vector<8x64xf32>
      %c0_116 = arith.constant 0 : index
      %c0_117 = arith.constant 0 : index
      %522 = vector.load %arg19[%c0_116, %c0_117] : memref<1x8xf32, #tpu.memory_space<vmem>>, vector<1x8xf32>
      %cst_118 = arith.constant dense<0.000000e+00> : vector<1x64xf32>
      %523 = tpu.matmul %522, %521, %cst_118 {dimension_numbers = #tpu.dot_dimension_numbers<[1], [0], [0], [1], [0, 0, 1, 1], [], []>} : vector<1x8xf32>, vector<8x64xf32>, vector<1x64xf32> -> vector<1x64xf32>
      %524 = vector.broadcast %523 : vector<1x64xf32> to vector<8x64xf32>
      %525 = arith.mulf %524, %9 : vector<8x64xf32>
      %c0_119 = arith.constant 0 : index
      %c0_120 = arith.constant 0 : index
      %526 = vector.load %arg20[%c0_119, %c0_120] : memref<64x8xf32, #tpu.memory_space<vmem>>, vector<64x8xf32>
      %cst_121 = arith.constant dense<0.000000e+00> : vector<8x8xf32>
      %527 = tpu.matmul %525, %526, %cst_121 {dimension_numbers = #tpu.dot_dimension_numbers<[1], [0], [0], [1], [0, 0, 1, 1], [], []>} : vector<8x64xf32>, vector<64x8xf32>, vector<8x8xf32> -> vector<8x8xf32>
      %c0_122 = arith.constant 0 : index
      %c0_123 = arith.constant 0 : index
      %528 = vector.load %arg21[%c0_122, %c0_123] : memref<1x8xf32, #tpu.memory_space<vmem>>, vector<1x8xf32>
      %529 = vector.broadcast %528 : vector<1x8xf32> to vector<8x8xf32>
      %530 = arith.addf %527, %529 : vector<8x8xf32>
      %531 = arith.addf %530, %arg27 : vector<8x8xf32>
      %cst_124 = arith.constant dense<0.000000e+00> : vector<8x64xf32>
      %532 = tpu.matmul %531, %8, %cst_124 {dimension_numbers = #tpu.dot_dimension_numbers<[1], [0], [0], [1], [0, 0, 1, 1], [], []>} : vector<8x8xf32>, vector<8x64xf32>, vector<8x64xf32> -> vector<8x64xf32>
      %533 = arith.mulf %532, %9 : vector<8x64xf32>
      %cst_125 = arith.constant dense<0.000000e+00> : vector<64xf32>
      %534 = vector.multi_reduction <add>, %533, %cst_125 [0] : vector<8x64xf32> to vector<64xf32>
      %535 = vector.shape_cast %534 : vector<64xf32> to vector<1x64xf32>
      %536 = vector.broadcast %arg26 : i32 to vector<7x64xi32>
      %537 = arith.cmpi eq, %18, %536 : vector<7x64xi32>
      %538 = vector.shape_cast %535 : vector<1x64xf32> to vector<1x64xf32>
      %539 = vector.broadcast %538 : vector<1x64xf32> to vector<7x64xf32>
      %540 = arith.select %537, %539, %arg30 : vector<7x64xi1>, vector<7x64xf32>
      %541 = vector.extract_strided_slice %arg28 {offsets = [1, 0], sizes = [6, 64], strides = [1, 1]} : vector<7x64xf32> to vector<6x64xf32>
      %542 = tpu.concatenate %541, %535 in 0 : vector<6x64xf32>, vector<1x64xf32> -> vector<7x64xf32>
      %cst_126 = arith.constant dense<0.000000e+00> : vector<8x48xf32>
      %543 = tpu.matmul %531, %0, %cst_126 {dimension_numbers = #tpu.dot_dimension_numbers<[1], [0], [0], [1], [0, 0, 1, 1], [], []>} : vector<8x8xf32>, vector<8x48xf32>, vector<8x48xf32> -> vector<8x48xf32>
      %544 = vector.broadcast %1 : vector<1x48xf32> to vector<8x48xf32>
      %545 = arith.addf %543, %544 : vector<8x48xf32>
      %546 = vector.extract_strided_slice %arg29 {offsets = [8, 0], sizes = [48, 48], strides = [1, 1]} : vector<56x48xf32> to vector<48x48xf32>
      %547 = tpu.concatenate %546, %545 in 0 : vector<48x48xf32>, vector<8x48xf32> -> vector<56x48xf32>
      scf.yield %531, %542, %547, %540 : vector<8x8xf32>, vector<7x64xf32>, vector<56x48xf32>, vector<7x64xf32>
    }
    %c7_i32_26 = arith.constant 7 : i32
    %c0_27 = arith.constant 0 : index
    %c0_28 = arith.constant 0 : index
    %c0_29 = arith.constant 0 : index
    %22 = vector.load %arg25[%c0_27, %c0_28, %c0_29] : memref<1x7x64xf32, #tpu.memory_space<vmem>>, vector<1x7x64xf32>
    %23 = vector.shape_cast %22 : vector<1x7x64xf32> to vector<7x64xf32>
    %24 = vector.shape_cast %21#3 : vector<7x64xf32> to vector<1x7x64xf32>
    tpu.vector_store %arg25[%c0_27, %c0_28, %c0_29], %24 {strides = array<i32>} : memref<1x7x64xf32, #tpu.memory_space<vmem>>, vector<1x7x64xf32>,
    return
  }
  func.func @transform_0(%arg0: i32) -> (i32, i32, i32) {
    %c0_i32 = arith.constant 0 : i32
    %c0_i32_0 = arith.constant 0 : i32
    %c0_i32_1 = arith.constant 0 : i32
    return %arg0, %c0_i32, %c0_i32_0 : i32, i32, i32
  }
  func.func @transform_1(%arg0: i32) -> (i32, i32, i32) {
    %c0_i32 = arith.constant 0 : i32
    %c0_i32_0 = arith.constant 0 : i32
    %c0_i32_1 = arith.constant 0 : i32
    return %arg0, %c0_i32, %c0_i32_0 : i32, i32, i32
  }
  func.func @transform_2(%arg0: i32) -> (i32, i32) {
    %c0_i32 = arith.constant 0 : i32
    %c0_i32_0 = arith.constant 0 : i32
    %c0_i32_1 = arith.constant 0 : i32
    return %c0_i32, %c0_i32_0 : i32, i32
  }
  func.func @transform_3(%arg0: i32) -> (i32, i32) {
    %c0_i32 = arith.constant 0 : i32
    %c0_i32_0 = arith.constant 0 : i32
    %c0_i32_1 = arith.constant 0 : i32
    return %c0_i32, %c0_i32_0 : i32, i32
  }
  func.func @transform_4(%arg0: i32) -> (i32, i32) {
    %c0_i32 = arith.constant 0 : i32
    %c0_i32_0 = arith.constant 0 : i32
    %c0_i32_1 = arith.constant 0 : i32
    return %c0_i32, %c0_i32_0 : i32, i32
  }
  func.func @transform_5(%arg0: i32) -> (i32, i32) {
    %c0_i32 = arith.constant 0 : i32
    %c0_i32_0 = arith.constant 0 : i32
    %c0_i32_1 = arith.constant 0 : i32
    return %c0_i32, %c0_i32_0 : i32, i32
  }
  func.func @transform_6(%arg0: i32) -> (i32, i32) {
    %c0_i32 = arith.constant 0 : i32
    %c0_i32_0 = arith.constant 0 : i32
    %c0_i32_1 = arith.constant 0 : i32
    return %c0_i32, %c0_i32_0 : i32, i32
  }
  func.func @transform_7(%arg0: i32) -> (i32, i32) {
    %c0_i32 = arith.constant 0 : i32
    %c0_i32_0 = arith.constant 0 : i32
    %c0_i32_1 = arith.constant 0 : i32
    return %c0_i32, %c0_i32_0 : i32, i32
  }
  func.func @transform_8(%arg0: i32) -> (i32, i32) {
    %c0_i32 = arith.constant 0 : i32
    %c0_i32_0 = arith.constant 0 : i32
    %c0_i32_1 = arith.constant 0 : i32
    return %c0_i32, %c0_i32_0 : i32, i32
  }
  func.func @transform_9(%arg0: i32) -> (i32, i32) {
    %c0_i32 = arith.constant 0 : i32
    %c0_i32_0 = arith.constant 0 : i32
    %c0_i32_1 = arith.constant 0 : i32
    return %c0_i32, %c0_i32_0 : i32, i32
  }
  func.func @transform_10(%arg0: i32) -> (i32, i32) {
    %c0_i32 = arith.constant 0 : i32
    %c0_i32_0 = arith.constant 0 : i32
    %c0_i32_1 = arith.constant 0 : i32
    return %c0_i32, %c0_i32_0 : i32, i32
  }
  func.func @transform_11(%arg0: i32) -> (i32, i32) {
    %c0_i32 = arith.constant 0 : i32
    %c0_i32_0 = arith.constant 0 : i32
    %c0_i32_1 = arith.constant 0 : i32
    return %c0_i32, %c0_i32_0 : i32, i32
  }
  func.func @transform_12(%arg0: i32) -> (i32, i32) {
    %c0_i32 = arith.constant 0 : i32
    %c0_i32_0 = arith.constant 0 : i32
    %c0_i32_1 = arith.constant 0 : i32
    return %c0_i32, %c0_i32_0 : i32, i32
  }
  func.func @transform_13(%arg0: i32) -> (i32, i32) {
    %c0_i32 = arith.constant 0 : i32
    %c0_i32_0 = arith.constant 0 : i32
    %c0_i32_1 = arith.constant 0 : i32
    return %c0_i32, %c0_i32_0 : i32, i32
  }
  func.func @transform_14(%arg0: i32) -> (i32, i32) {
    %c0_i32 = arith.constant 0 : i32
    %c0_i32_0 = arith.constant 0 : i32
    %c0_i32_1 = arith.constant 0 : i32
    return %c0_i32, %c0_i32_0 : i32, i32
  }
  func.func @transform_15(%arg0: i32) -> (i32, i32) {
    %c0_i32 = arith.constant 0 : i32
    %c0_i32_0 = arith.constant 0 : i32
    %c0_i32_1 = arith.constant 0 : i32
    return %c0_i32, %c0_i32_0 : i32, i32
  }
  func.func @transform_16(%arg0: i32) -> (i32, i32) {
    %c0_i32 = arith.constant 0 : i32
    %c0_i32_0 = arith.constant 0 : i32
    %c0_i32_1 = arith.constant 0 : i32
    return %c0_i32, %c0_i32_0 : i32, i32
  }
  func.func @transform_17(%arg0: i32) -> (i32, i32) {
    %c0_i32 = arith.constant 0 : i32
    %c0_i32_0 = arith.constant 0 : i32
    %c0_i32_1 = arith.constant 0 : i32
    return %c0_i32, %c0_i32_0 : i32, i32
  }
  func.func @transform_18(%arg0: i32) -> (i32, i32) {
    %c0_i32 = arith.constant 0 : i32
    %c0_i32_0 = arith.constant 0 : i32
    %c0_i32_1 = arith.constant 0 : i32
    return %c0_i32, %c0_i32_0 : i32, i32
  }
  func.func @transform_19(%arg0: i32) -> (i32, i32) {
    %c0_i32 = arith.constant 0 : i32
    %c0_i32_0 = arith.constant 0 : i32
    %c0_i32_1 = arith.constant 0 : i32
    return %c0_i32, %c0_i32_0 : i32, i32
  }
  func.func @transform_20(%arg0: i32) -> (i32, i32) {
    %c0_i32 = arith.constant 0 : i32
    %c0_i32_0 = arith.constant 0 : i32
    %c0_i32_1 = arith.constant 0 : i32
    return %c0_i32, %c0_i32_0 : i32, i32
  }
  func.func @transform_21(%arg0: i32) -> (i32, i32) {
    %c0_i32 = arith.constant 0 : i32
    %c0_i32_0 = arith.constant 0 : i32
    %c0_i32_1 = arith.constant 0 : i32
    return %c0_i32, %c0_i32_0 : i32, i32
  }
  func.func @transform_22(%arg0: i32) -> (i32, i32) {
    %c0_i32 = arith.constant 0 : i32
    %c0_i32_0 = arith.constant 0 : i32
    %c0_i32_1 = arith.constant 0 : i32
    return %c0_i32, %c0_i32_0 : i32, i32
  }
  func.func @transform_23(%arg0: i32) -> (i32, i32) {
    %c0_i32 = arith.constant 0 : i32
    %c0_i32_0 = arith.constant 0 : i32
    %c0_i32_1 = arith.constant 0 : i32
    return %c0_i32, %c0_i32_0 : i32, i32
  }
  func.func @transform_24(%arg0: i32) -> (i32, i32, i32) {
    %c0_i32 = arith.constant 0 : i32
    %c0_i32_0 = arith.constant 0 : i32
    %c0_i32_1 = arith.constant 0 : i32
    return %arg0, %c0_i32, %c0_i32_0 : i32, i32, i32
  }
}

</mosaic_0001>

<bundles_post_ra>
// kernel: tpu_custom_call.1
= control target key start
LH: loop header
LB: loop body
LE: loop exit
PB: predicated region body
PF: predicated region fallthrough
CT: control target
= control target key end

     0   :  { %s4357_s0 = inlined_call_operand.vmem [shape: f32[1,7,64], index: 0, kind: input, shape index: {}]   ;;  %s4358_s1 = inlined_call_operand.vmem [shape: f32[1,56,8], index: 1, kind: input, shape index: {}]   ;;  %s4359_s2 = inlined_call_operand.vmem [shape: f32[8,48], index: 2, kind: input, shape index: {}]   ;;  %s4360_s3 = inlined_call_operand.vmem [shape: f32[1,48], index: 3, kind: input, shape index: {}]   ;;  %s4361_s4 = inlined_call_operand.vmem [shape: f32[32,96], index: 4, kind: input, shape index: {}]   ;;  %s4362_s5 = inlined_call_operand.hbm [shape: f32[1,96], index: 5, kind: input, shape index: {}]   ;;  %s4363_s6 = inlined_call_operand.vmem [shape: f32[16,48], index: 6, kind: input, shape index: {}]   ;;  %s4364_s7 = inlined_call_operand.vmem [shape: f32[1,48], index: 7, kind: input, shape index: {}]   ;;  %s4365_s8 = inlined_call_operand.vmem [shape: f32[16,8], index: 8, kind: input, shape index: {}]   ;;  %s4366_s9 = inlined_call_operand.vmem [shape: f32[1,8], index: 9, kind: input, shape index: {}]   ;;  %s4367_s10 = inlined_call_operand.vmem [shape: f32[8,8], index: 10, kind: input, shape index: {}]   ;;  %s4368_s11 = inlined_call_operand.vmem [shape: f32[8,64], index: 11, kind: input, shape index: {}]   ;;  %s4369_s12 = inlined_call_operand.vmem [shape: f32[1,64], index: 12, kind: input, shape index: {}]   ;;  %s4370_s13 = inlined_call_operand.vmem [shape: f32[1,64], index: 13, kind: input, shape index: {}]   ;;  %s4371_s14 = inlined_call_operand.vmem [shape: f32[8,8], index: 14, kind: input, shape index: {}]   ;;  %s4372_s15 = inlined_call_operand.vmem [shape: f32[8,64], index: 15, kind: input, shape index: {}]   ;;  %s4373_s16 = inlined_call_operand.vmem [shape: f32[1,64], index: 16, kind: input, shape index: {}]   ;;  %s4374_s17 = inlined_call_operand.vmem [shape: f32[1,64], index: 17, kind: input, shape index: {}]   ;;  %s4375_s18 = inlined_call_operand.vmem [shape: f32[1,8], index: 18, kind: input, shape index: {}]   ;;  %s4376_s19 = inlined_call_operand.vmem [shape: f32[64,8], index: 19, kind: input, shape index: {}]   ;;  %s4377_s20 = inlined_call_operand.vmem [shape: f32[1,8], index: 20, kind: input, shape index: {}]   ;;  %s4378_s21 = inlined_call_operand.vmem [shape: f32[64,64], index: 21, kind: input, shape index: {}]   ;;  %s4379_s22 = inlined_call_operand.vmem [shape: f32[8,64], index: 22, kind: input, shape index: {}]   ;;  %s4380_s23 = inlined_call_operand.vmem [shape: f32[8,64], index: 23, kind: input, shape index: {}]   ;;  %s4381_s24 = inlined_call_operand.vmem [shape: f32[1,7,64], index: 24, kind: output, shape index: {}]  }
   0x1   :  { %4387 = sst [smem:[#allocation5_spill]] %s4357_s0 }
   0x2   :  { %4388 = sst [smem:[#allocation6_spill]] %s4358_s1 }
   0x3   :  { %4389 = sst [smem:[#allocation7_spill]] %s4359_s2 }
   0x4   :  { %4390 = sst [smem:[#allocation8_spill]] %s4360_s3 }
   0x5   :  { %4391 = sst [smem:[#allocation9_spill]] %s4361_s4 }
   0x6   :  { %4392 = sst [smem:[#allocation10_spill]] %s4362_s5 }
   0x7   :  { %4393 = sst [smem:[#allocation11_spill]] %s4363_s6 }
   0x8   :  { %4394 = sst [smem:[#allocation12_spill]] %s4364_s7 }
   0x9   :  { %4395 = sst [smem:[#allocation13_spill]] %s4365_s8 }
   0xa   :  { %4396 = sst [smem:[#allocation14_spill]] %s4377_s20 }
   0xb   :  { %29 = vsyncpa [#allocation3], 0  ;;  %s3632_s5 = smov [#allocation2]   ;;  %s4397_s6 = sld [smem:[#allocation10_spill]] }
   0xc   :  { %s46_s26 = sshll.u32 %s3632_s5, 4  ;;  %s47_s26 = int_to_ptr.vmem [resolvable:$true] %s46_s26 }
  0x11   :  { %s3520_s2 = scalar_lea.hbm %s4397_s6, 16 }
  0x12   :  { %p3521_p0 = scmp.ne.s32.totalorder %s4397_s6, %s3520_s2  ;;  %p3524_p1 = scmp.lt.u32.totalorder %s3520_s2, %s4397_s6 }
  0x14   :  { %p3526_p2 = pnand %p3524_p1, %p3521_p0 }
  0x16   :  { %3529 = shalt.err (!%p3526_p2)
}
  0x17   :  { %s3530_s30 = scalar_lea.vmem %s47_s26, 16  ;;  %s3534_s3 = scalar_lea.vmem %s47_s26, 32 }
  0x18   :  { %p3531_p3 = scmp.ne.s32.totalorder %s47_s26, %s3530_s30  ;;  %p3535_p4 = scmp.lt.s32.totalorder %s47_s26, %s47_s26 }
  0x19   :  { %p3536_p5 = scmp.lt.s32.totalorder %s3534_s3, %s3530_s30 }
  0x1b   :  { %p3537_p6 = por %p3536_p5, %p3535_p4 }
  0x1d   :  { %p3538_p7 = pnand %p3537_p6, %p3531_p3 }
  0x1f   :  { %3541 = shalt.err (!%p3538_p7)
}
  0x20   :  { %49 = dma.hbm_to_vmem [thread:$0]  %s4397_s6, 16, %s47_s26, [#allocation3]  }
  0x21   :  { %3586 = dma.done.wait [#allocation3], 16  }
  0x22   :  { %3587 = vsyncadd [#allocation3], 4294967280  ;;  %v3633_v0 = vmov 0.0   ;;  %vm3634_vm0 = vmmov 0   ;;  %s4398_s1 = sld [smem:[#allocation9_spill]]  ;;  %s4399_s7 = sld [smem:[#allocation11_spill]]  ;;  %v240_v23 = vlaneseq }
  0x23   :  { %2923 = vmatprep.subr.mxu0 %v3633_v0  ;;  %2925 = vmatprep.mubr.msk.f32.mxu0 %vm3634_vm0, %v3633_v0  ;;  %v3803_v5 = vld [vmem:[#allocation2] ss:$0 sm:$0xff]  ;;  %s4400_s20 = sld [smem:[#allocation12_spill]]  ;;  %s4401_s5 = sld [smem:[#allocation13_spill]]  ;;  %v3833_v11 = vld [vmem:[%s4366_s9] ss:$0 sm:$0xff] }
  0x24   :  { %3330 = vmatprep.subr.mxu1 %v3633_v0  ;;  %2937 = vmatprep.mubr.msk.f32.mxu1 %vm3634_vm0, %v3633_v0  ;;  %v3838_v12 = vld [vmem:[%s4379_s22] sm:$0xff]  ;;  %vm118_vm1 = vcmask 64512   ;;  %s4402_s25 = sld [smem:[#allocation5_spill]]  ;;  %s4403_s4 = sld [smem:[#allocation7_spill]]  ;;  %v3888_v24 = vshrl.u32 %v240_v23, 7  ;;  %v3902_v47 = vmov 0.0  }
  0x25   :  { %v3843_v13 = vld [vmem:[%s4380_s23] sm:$0xff] }
  0x28   :  { %v3786_v1 = vld [vmem:[%s4398_s1] sm:$0xff]  ;;  %v3791_v2 = vld [vmem:[%s4398_s1 + $0x8] sm:$0xff]  ;;  %v3796_v3 = vld [vmem:[%s4398_s1 + $0x10] sm:$0xff] }
  0x29   :  { %v3801_v4 = vld [vmem:[%s4398_s1 + $0x18] sm:$0xff]  ;;  %v3808_v6 = vld [vmem:[%s4399_s7] sm:$0xff]  ;;  %v3813_v7 = vld [vmem:[%s4399_s7 + $0x8] sm:$0xff]  ;;  %s4404_s1 = sld [smem:[#allocation6_spill]] }
  0x2a   :  { %v3818_v8 = vld [vmem:[%s4400_s20] ss:$0 sm:$0xff]  ;;  %v3828_v10 = vld [vmem:[%s4401_s5 + $0x8] sm:$0xff]  ;;  %s4405_s20 = sld [smem:[#allocation8_spill]] }
  0x2b   :  { %v3823_v9 = vld [vmem:[%s4401_s5] sm:$0xff] }
  0x2c   :  { %v104_v14 = vld [vmem:[%s4402_s25] sm:$0x7f]  }
  0x2d   :  { %v3851_v15 = vld [vmem:[%s4403_s4] sm:$0xff]  ;;  %s3922_s4 = smov 0  }
  0x2e   :  { %2924 = vmatpush3.msra.mxu0 %v3851_v15  ;;  %3331 = vmatpush3.msra.mxu1 %v3851_v15 }
  0x2f   :  { %v105_v16 = vld [vmem:[%s4404_s1] sm:$0xff]  ;;  %v106_v18 = vld [vmem:[%s4404_s1 + $0x8] sm:$0xff]  ;;  %v107_v20 = vld [vmem:[%s4404_s1 + $0x10] sm:$0xff] }
  0x30   :  { %v109_v17 = vld [vmem:[%s4404_s1 + $0x20] sm:$0xff]  ;;  %2926 = vmatmul.mubr.msk.f32.vlgmr.msra.gmra.mrb[0].mxu0 %vm118_vm1, %v105_v16  ;;  %v110_v19 = vld [vmem:[%s4404_s1 + $0x28] sm:$0xff]  ;;  %v111_v21 = vld [vmem:[%s4404_s1 + $0x30] sm:$0xff]  }
  0x31   :  { %2938 = vmatmul.mubr.msk.f32.vlgmr.msra.gmra.mrb[0].mxu1 %vm118_vm1, %v109_v17  ;;  %2928 = vmatprep.mubr.msk.f32.mxu0 %vm3634_vm0, %v3633_v0  ;;  %v108_v22 = vld [vmem:[%s4404_s1 + $0x18] sm:$0xff]  ;;  %v3893_v25 = vld [vmem:[%s4405_s20] ss:$0 sm:$0xff] }
  0x32   :  { %2940 = vmatprep.mubr.msk.f32.mxu1 %vm3634_vm0, %v3633_v0 }
  0x34   :  { %2929 = vmatmul.mubr.msk.f32.gmra.mrb[2].mxu0 %vm118_vm1, %v106_v18 }
  0x35   :  { %2941 = vmatmul.mubr.msk.f32.gmra.mrb[2].mxu1 %vm118_vm1, %v110_v19  ;;  %2931 = vmatprep.mubr.msk.f32.mxu0 %vm3634_vm0, %v3633_v0 }
  0x36   :  { %2943 = vmatprep.mubr.msk.f32.mxu1 %vm3634_vm0, %v3633_v0 }
  0x38   :  { %2932 = vmatmul.mubr.msk.f32.gmra.mrb[4].mxu0 %vm118_vm1, %v107_v20 }
  0x39   :  { %2944 = vmatmul.mubr.msk.f32.gmra.mrb[4].mxu1 %vm118_vm1, %v111_v21  ;;  %2934 = vmatprep.mubr.msk.f32.mxu0 %vm3634_vm0, %v3633_v0 }
  0x3c   :  { %2935 = vmatmul.mubr.msk.f32.gmra.mrb[6].mxu0 %vm118_vm1, %v108_v22 }
 0x103   :  { %v206_v26 = vpop.f32.mrb[0].mxu0 }
 0x104   :  { %v226_v27 = vpop.f32.mrb[0].mxu1  ;;  %v207_v28 = vadd.f32 %v3893_v25, %v206_v26   ;;  %v2927_v29 = vpop.f32.mrb[1].mxu0 }
 0x105   :  { %v227_v30 = vadd.f32 %v3893_v25, %v226_v27   ;;  %v2939_v31 = vpop.f32.mrb[1].mxu1 }
 0x107   :  { %v211_v32 = vpop.f32.mrb[2].mxu0 }
 0x108   :  { %v231_v33 = vpop.f32.mrb[2].mxu1  ;;  %v212_v34 = vadd.f32 %v3893_v25, %v211_v32   ;;  %v2930_v35 = vpop.f32.mrb[3].mxu0 }
 0x109   :  { %v232_v36 = vadd.f32 %v3893_v25, %v231_v33   ;;  %v2942_v37 = vpop.f32.mrb[3].mxu1 }
 0x10b   :  { %v216_v38 = vpop.f32.mrb[4].mxu0 }
 0x10c   :  { %v236_v39 = vpop.f32.mrb[4].mxu1  ;;  %v217_v40 = vadd.f32 %v3893_v25, %v216_v38   ;;  %v2933_v41 = vpop.f32.mrb[5].mxu0 }
 0x10d   :  { %v237_v42 = vadd.f32 %v3893_v25, %v236_v39   ;;  %v2945_v43 = vpop.f32.mrb[5].mxu1 }
 0x10f   :  { %v221_v44 = vpop.f32.mrb[6].mxu0 }
 0x110   :  { %v222_v45 = vadd.f32 %v3893_v25, %v221_v44   ;;  %v2936_v46 = vpop.f32.mrb[7].mxu0 }
 0x111 LB: > { %v4406_v48 = vmov %v3594_v42  ;;  %v4407_v49 = vmov %v3598_v36  ;;  %v4408_v50 = vmov %v3602_v30  ;;  %v4409_v51 = vmov %v3606_v45  ;;  %s3638_s9 = smov 96   ;;  %s3639_s22 = smov 32   ;;  %s3630_s4 = sphi %s3922_s4, %s247_s4   ;;  %v3626_v21 = vphi %v111_v21, %v2542_v21   ;;  %v3622_v14 = vphi %v104_v14, %v2631_v14   ;;  %v3618_v28 = vphi %v207_v28, %v4419_v28   ;;  %v3614_v34 = vphi %v212_v34, %v4418_v34   ;;  %v3610_v40 = vphi %v217_v40, %v4417_v40   ;;  %v3606_v45 = vphi %v222_v45, %v4416_v45   ;;  %v3602_v30 = vphi %v227_v30, %v4415_v30   ;;  %v3598_v36 = vphi %v232_v36, %v4414_v36   ;;  %v3594_v42 = vphi %v237_v42, %v2699_v42   ;;  %v3590_v47 = vphi %v3902_v47, %v4413_v47  }
 0x112   : > { %v4410_v52 = vmov %v3610_v40  ;;  %v4411_v53 = vmov %v3614_v34  ;;  %v3957_v54 = vpack.c.bf16 %v3791_v2, %v3786_v1  ;;  %v3635_v55 = vmov 0.0|0.0   ;;  %s3640_s1 = smov 80   ;;  %s3641_s5 = smov 112  }
 0x113   : > { %3204 = vmatprep.subr.bf16.mxu0 %v3635_v55  ;;  %3210 = vmatprep.subr.bf16.mxu1 %v3635_v55  ;;  %v3964_v56 = vpack.c.bf16 %v3801_v4, %v3796_v3  ;;  %vm3636_vm2 = vmmov 0   ;;  %v3637_v57 = vmov 0.0   ;;  %v3986_v22 = vpack.c.bf16 %v3813_v7, %v3808_v6  ;;  %s3642_s23 = smov 48   ;;  %s3643_s27 = smov 16  }
 0x114   : > { %3206 = vmatpush3.bf16.msra.mxu0 %v3957_v54  ;;  %2954 = vmatprep.mubr.msk.f32.mxu0 %vm3636_vm2, %v3637_v57  ;;  %vm373_vm3 = vcmask 130048   ;;  %vm264_vm4 = vcmask 261120   ;;  %vm1873_vm5 = vcmask 523264   ;;  %vm1881_vm6 = vcmask 1046528  }
 0x115   : > { %3207 = vmatprep.subr.bf16.mxu0 %v3635_v55  ;;  %2961 = vmatprep.mubr.msk.f32.mxu1 %vm3636_vm2, %v3637_v57  ;;  %vm2630_vm8 = vcmask 1045504  }
 0x116   : > { %3212 = vmatpush3.bf16.msra.mxu1 %v3986_v22 }
 0x117   : > { %3213 = vmatprep.subr.bf16.mxu1 %v3635_v55 }
 0x118   : > { %3209 = vmatpush3.bf16.msra.mxu0 %v3964_v56 }
 0x119   : > { %3222 = vmatprep.subr.bf16.mxu0 %v3635_v55 }
 0x11b   : > { %2955 = vmatmul.mubr.f32.vlgmr.msra.gmra.mrb[0].mxu0 %v3637_v57 }
 0x11c   : > { %3224 = vmatpush3.bf16.msra.mxu0 %v3957_v54  ;;  %2990 = vmatprep.mubr.msk.f32.mxu0 %vm3636_vm2, %v3637_v57 }
 0x11d   : > { %3225 = vmatprep.subr.bf16.mxu0 %v3635_v55 }
 0x120   : > { %3227 = vmatpush3.bf16.msra.mxu0 %v3964_v56 }
 0x121   : > { %3237 = vmatprep.subr.bf16.mxu0 %v3635_v55 }
 0x1ee   : > { %v334_v58 = vpop.f32.mrb[0].mxu0 }
 0x1ef   : > { %v335_v59 = vadd.f32 %v3803_v5, %v334_v58  ;;  %v2956_v60 = vpop.f32.mrb[1].mxu0 }
 0x1f1   : > { %346 = vrot.lane.b32.xlu0 %v335_v59, %s3638_s9  ;;  %v338_v61 = vadd.f32 %v3618_v28, %v335_v59 }
 0x1f3   : > { %v2753_v62 = vmul.f32 -1.442695, %v338_v61 }
 0x1f5   : > { %3432 = vpow2.f32 %v2753_v62 }
 0x1ff   : > { %v3433_v63 = vpop.eup %3432 }
 0x200   : > { %v342_v0 = vadd.f32 1.0, %v3433_v63 }
 0x202   : > { %3434 = vrcp.f32 %v342_v0 }
 0x20c   : > { %v3435_v16 = vpop.eup %3434 }
 0x20d   : > { %v356_v26 = vsub.f32 1.0, %v3435_v16  ;;  %v362_v29 = vmul.f32 0.0, %v3435_v16 }
 0x263   : > { %v347_v17 = vpop.permute.xlu0 %346 }
 0x264   : > { %v349_v18 = vmul.f32 %v3435_v16, %v347_v17 }
 0x266   : > { %351 = vrot.lane.b32.xlu0 %v349_v18, %s3639_s22 }
 0x26a   : > { %446 = vrot.lane.b32.xlu0 %v335_v59, %s3640_s1 }
 0x2d8   : > { %v352_v19 = vpop.permute.xlu0 %351 }
 0x2d9   : > { %v354_v20 = vadd.f32 %v3618_v28, %v352_v19 }
 0x2db   : > { %3436 = vtanh.f32 %v354_v20 }
 0x2dc   : > { %v447_v35 = vpop.permute.xlu0 %446 }
 0x2e5   : > { %v3437_v23 = vpop.eup %3436 }
 0x2e6   : > { %358 = vrot.lane.b32.xlu1 %v3437_v23, %s3641_s5 }
 0x358   : > { %v359_v27 = vpop.permute.xlu1 %358 }
 0x359   : > { %v361_v30 = vmul.f32 %v359_v27, %v356_v26 }
 0x35b   : > { %v363_v31 = vadd.f32 %v362_v29, %v361_v30 }
 0x35d   : > { %371 = vrot.lane.b32.xlu1 %v363_v31, %s3641_s5 }
 0x361   : > { %456 = vrot.lane.b32.xlu1 %v335_v59, %s3642_s23 }
 0x3cf   : > { %v372_v28 = vpop.permute.xlu1 %371 }
 0x3d0   : > { %2962 = vmatmul.mubr.msk.f32.vlgmr.msra.gmra.mrb[0].mxu1 %vm373_vm3, %v372_v28 }
 0x3d1   : > { %3215 = vmatpush3.bf16.msra.mxu1 %v3957_v54  ;;  %2972 = vmatprep.mubr.msk.f32.mxu1 %vm3636_vm2, %v3637_v57 }
 0x3d2   : > { %3216 = vmatprep.subr.bf16.mxu1 %v3635_v55 }
 0x3d3   : > { %v457_v41 = vpop.permute.xlu1 %456 }
 0x3d5   : > { %3218 = vmatpush3.bf16.msra.mxu1 %v3964_v56 }
 0x3d6   : > { %3219 = vmatprep.subr.bf16.mxu1 %v3635_v55 }
 0x4a3   : > { %v442_v32 = vpop.f32.mrb[0].mxu1 }
 0x4a4   : > { %v443_v33 = vadd.f32 %v3818_v8, %v442_v32  ;;  %v2963_v34 = vpop.f32.mrb[1].mxu1 }
 0x4a6   : > { %v449_v36 = vadd.f32 %v447_v35, %v443_v33 }
 0x4a8   : > { %v2756_v37 = vmul.f32 -1.442695, %v449_v36 }
 0x4aa   : > { %3438 = vpow2.f32 %v2756_v37 }
 0x4b4   : > { %v3439_v38 = vpop.eup %3438 }
 0x4b5   : > { %v453_v39 = vadd.f32 1.0, %v3439_v38 }
 0x4b7   : > { %3440 = vrcp.f32 %v453_v39 }
 0x4c1   : > { %v3441_v40 = vpop.eup %3440 }
 0x4c2   : > { %v459_v42 = vmul.f32 %v3441_v40, %v457_v41  ;;  %v466_v46 = vsub.f32 1.0, %v3441_v40  ;;  %v472_v59 = vmul.f32 0.0, %v3441_v40 }
 0x4c4   : > { %461 = vrot.lane.b32.xlu0 %v459_v42, %s3639_s22 }
 0x536   : > { %v462_v43 = vpop.permute.xlu0 %461 }
 0x537   : > { %v464_v44 = vadd.f32 %v462_v43, %v443_v33 }
 0x539   : > { %3442 = vtanh.f32 %v464_v44 }
 0x543   : > { %v3443_v45 = vpop.eup %3442 }
 0x544   : > { %468 = vrot.lane.b32.xlu1 %v3443_v45, %s3641_s5 }
 0x5b6   : > { %v469_v58 = vpop.permute.xlu1 %468 }
 0x5b7   : > { %v471_v60 = vmul.f32 %v469_v58, %v466_v46 }
 0x5b9   : > { %v473_v61 = vadd.f32 %v472_v59, %v471_v60 }
 0x5bb   : > { %v475_v62 = vsel %vm373_vm3, %v372_v28, %v473_v61 }
 0x5bc   : > { %2973 = vmatmul.mubr.msk.f32.vlgmr.msra.gmra.mrb[2].mxu1 %vm264_vm4, %v475_v62 }
 0x5bd   : > { %3221 = vmatpush3.bf16.msra.mxu1 %v3986_v22  ;;  %2979 = vmatprep.mubr.msk.f32.mxu1 %vm3636_vm2, %v3637_v57 }
 0x5be   : > { %3228 = vmatprep.subr.bf16.mxu1 %v3635_v55 }
 0x68f   : > { %v545_v63 = vpop.f32.mrb[2].mxu1 }
 0x690   : > { %v546_v0 = vadd.f32 %v3803_v5, %v545_v63  ;;  %v2974_v16 = vpop.f32.mrb[3].mxu1 }
 0x692   : > { %557 = vrot.lane.b32.xlu0 %v546_v0, %s3638_s9  ;;  %v549_v17 = vadd.f32 %v4411_v53, %v546_v0 }
 0x694   : > { %v2758_v18 = vmul.f32 -1.442695, %v549_v17 }
 0x696   : > { %3444 = vpow2.f32 %v2758_v18 }
 0x6a0   : > { %v3445_v19 = vpop.eup %3444 }
 0x6a1   : > { %v553_v20 = vadd.f32 1.0, %v3445_v19 }
 0x6a3   : > { %3446 = vrcp.f32 %v553_v20 }
 0x6ad   : > { %v3447_v23 = vpop.eup %3446 }
 0x6ae   : > { %v567_v32 = vsub.f32 1.0, %v3447_v23 }
 0x704   : > { %v558_v26 = vpop.permute.xlu0 %557 }
 0x705   : > { %v560_v27 = vmul.f32 %v3447_v23, %v558_v26 }
 0x707   : > { %562 = vrot.lane.b32.xlu1 %v560_v27, %s3639_s22 }
 0x70b   : > { %573 = vrot.lane.b32.xlu1 %v475_v62, %s3643_s27 }
 0x70f   : > { %653 = vrot.lane.b32.xlu1 %v546_v0, %s3640_s1 }
 0x779   : > { %v563_v29 = vpop.permute.xlu1 %562 }
 0x77a   : > { %v565_v30 = vadd.f32 %v4411_v53, %v563_v29 }
 0x77c   : > { %3448 = vtanh.f32 %v565_v30 }
 0x77d   : > { %v574_v28 = vpop.permute.xlu1 %573 }
 0x77e   : > { %v576_v34 = vmul.f32 %v3447_v23, %v574_v28 }
 0x781   : > { %v654_v41 = vpop.permute.xlu1 %653 }
 0x786   : > { %v3449_v31 = vpop.eup %3448 }
 0x787   : > { %569 = vrot.lane.b32.xlu0 %v3449_v31, %s3641_s5 }
 0x7f9   : > { %v570_v33 = vpop.permute.xlu0 %569 }
 0x7fa   : > { %v572_v35 = vmul.f32 %v570_v33, %v567_v32 }
 0x7fc   : > { %v577_v36 = vadd.f32 %v576_v34, %v572_v35 }
 0x7fe   : > { %579 = vrot.lane.b32.xlu0 %v577_v36, %s3641_s5 }
 0x802   : > { %663 = vrot.lane.b32.xlu0 %v546_v0, %s3642_s23 }
 0x870   : > { %v580_v37 = vpop.permute.xlu0 %579 }
 0x871   : > { %2980 = vmatmul.mubr.msk.f32.vlgmr.msra.gmra.mrb[4].mxu1 %vm373_vm3, %v580_v37 }
 0x872   : > { %3230 = vmatpush3.bf16.msra.mxu1 %v3986_v22  ;;  %2997 = vmatprep.mubr.msk.f32.mxu1 %vm3636_vm2, %v3637_v57 }
 0x873   : > { %3231 = vmatprep.subr.bf16.mxu1 %v3635_v55 }
 0x874   : > { %v664_v58 = vpop.permute.xlu0 %663 }
 0x944   : > { %v649_v38 = vpop.f32.mrb[4].mxu1 }
 0x945   : > { %v650_v39 = vadd.f32 %v3818_v8, %v649_v38  ;;  %v2981_v40 = vpop.f32.mrb[5].mxu1 }
 0x947   : > { %v656_v42 = vadd.f32 %v654_v41, %v650_v39 }
 0x949   : > { %v2760_v43 = vmul.f32 -1.442695, %v656_v42 }
 0x94b   : > { %3450 = vpow2.f32 %v2760_v43 }
 0x955   : > { %v3451_v44 = vpop.eup %3450 }
 0x956   : > { %v660_v45 = vadd.f32 1.0, %v3451_v44 }
 0x958   : > { %3452 = vrcp.f32 %v660_v45 }
 0x962   : > { %v3453_v46 = vpop.eup %3452 }
 0x963   : > { %v666_v59 = vmul.f32 %v3453_v46, %v664_v58  ;;  %v673_v0 = vsub.f32 1.0, %v3453_v46  ;;  %v679_v17 = vmul.f32 %v3453_v46, %v475_v62 }
 0x965   : > { %668 = vrot.lane.b32.xlu1 %v666_v59, %s3639_s22 }
 0x9d7   : > { %v669_v60 = vpop.permute.xlu1 %668 }
 0x9d8   : > { %v671_v61 = vadd.f32 %v669_v60, %v650_v39 }
 0x9da   : > { %3454 = vtanh.f32 %v671_v61 }
 0x9e4   : > { %v3455_v63 = vpop.eup %3454 }
 0x9e5   : > { %675 = vrot.lane.b32.xlu0 %v3455_v63, %s3641_s5 }
 0xa57   : > { %v676_v16 = vpop.permute.xlu0 %675 }
 0xa58   : > { %v678_v18 = vmul.f32 %v676_v16, %v673_v0 }
 0xa5a   : > { %v680_v19 = vadd.f32 %v679_v17, %v678_v18 }
 0xa5c   : > { %v682_v20 = vsel %vm373_vm3, %v580_v37, %v680_v19 }
 0xa5d   : > { %2991 = vmatmul.mubr.msk.f32.vlgmr.msra.gmra.mrb[2].mxu0 %vm264_vm4, %v682_v20 }
 0xa5e   : > { %3239 = vmatpush3.bf16.msra.mxu0 %v3986_v22  ;;  %3015 = vmatprep.mubr.msk.f32.mxu0 %vm3636_vm2, %v3637_v57 }
 0xa5f   : > { %3240 = vmatprep.subr.bf16.mxu0 %v3635_v55 }
 0xb30   : > { %v752_v23 = vpop.f32.mrb[2].mxu0 }
 0xb31   : > { %v753_v26 = vadd.f32 %v3803_v5, %v752_v23  ;;  %v2992_v27 = vpop.f32.mrb[3].mxu0 }
 0xb33   : > { %764 = vrot.lane.b32.xlu1 %v753_v26, %s3638_s9  ;;  %v756_v62 = vadd.f32 %v4410_v52, %v753_v26 }
 0xb35   : > { %v2762_v29 = vmul.f32 -1.442695, %v756_v62 }
 0xb37   : > { %3456 = vpow2.f32 %v2762_v29 }
 0xb41   : > { %v3457_v30 = vpop.eup %3456 }
 0xb42   : > { %v760_v31 = vadd.f32 1.0, %v3457_v30 }
 0xb44   : > { %3458 = vrcp.f32 %v760_v31 }
 0xb4e   : > { %v3459_v28 = vpop.eup %3458 }
 0xb4f   : > { %v774_v38 = vsub.f32 1.0, %v3459_v28 }
 0xba5   : > { %v765_v32 = vpop.permute.xlu1 %764 }
 0xba6   : > { %v767_v33 = vmul.f32 %v3459_v28, %v765_v32 }
 0xba8   : > { %769 = vrot.lane.b32.xlu0 %v767_v33, %s3639_s22 }
 0xbac   : > { %780 = vrot.lane.b32.xlu0 %v682_v20, %s3643_s27 }
 0xbb0   : > { %860 = vrot.lane.b32.xlu0 %v753_v26, %s3640_s1 }
 0xc1a   : > { %v770_v34 = vpop.permute.xlu0 %769 }
 0xc1b   : > { %v772_v35 = vadd.f32 %v4410_v52, %v770_v34 }
 0xc1d   : > { %3460 = vtanh.f32 %v772_v35 }
 0xc1e   : > { %v781_v37 = vpop.permute.xlu0 %780 }
 0xc1f   : > { %v783_v40 = vmul.f32 %v3459_v28, %v781_v37 }
 0xc22   : > { %v861_v58 = vpop.permute.xlu0 %860 }
 0xc27   : > { %v3461_v36 = vpop.eup %3460 }
 0xc28   : > { %776 = vrot.lane.b32.xlu1 %v3461_v36, %s3641_s5 }
 0xc9a   : > { %v777_v39 = vpop.permute.xlu1 %776 }
 0xc9b   : > { %v779_v41 = vmul.f32 %v777_v39, %v774_v38 }
 0xc9d   : > { %v784_v42 = vadd.f32 %v783_v40, %v779_v41 }
 0xc9f   : > { %786 = vrot.lane.b32.xlu1 %v784_v42, %s3641_s5 }
 0xca3   : > { %870 = vrot.lane.b32.xlu1 %v753_v26, %s3642_s23 }
 0xd11   : > { %v787_v43 = vpop.permute.xlu1 %786 }
 0xd12   : > { %2998 = vmatmul.mubr.msk.f32.vlgmr.msra.gmra.mrb[6].mxu1 %vm373_vm3, %v787_v43 }
 0xd13   : > { %3233 = vmatpush3.bf16.msra.mxu1 %v3957_v54  ;;  %3008 = vmatprep.mubr.msk.f32.mxu1 %vm3636_vm2, %v3637_v57 }
 0xd14   : > { %3234 = vmatprep.subr.bf16.mxu1 %v3635_v55 }
 0xd15   : > { %v871_v16 = vpop.permute.xlu1 %870 }
 0xd17   : > { %3236 = vmatpush3.bf16.msra.mxu1 %v3964_v56 }
 0xd18   : > { %3246 = vmatprep.subr.bf16.mxu1 %v3635_v55 }
 0xde5   : > { %v856_v44 = vpop.f32.mrb[6].mxu1 }
 0xde6   : > { %v857_v45 = vadd.f32 %v3818_v8, %v856_v44  ;;  %v2999_v46 = vpop.f32.mrb[7].mxu1 }
 0xde8   : > { %v863_v59 = vadd.f32 %v861_v58, %v857_v45 }
 0xdea   : > { %v2764_v60 = vmul.f32 -1.442695, %v863_v59 }
 0xdec   : > { %3462 = vpow2.f32 %v2764_v60 }
 0xdf6   : > { %v3463_v61 = vpop.eup %3462 }
 0xdf7   : > { %v867_v63 = vadd.f32 1.0, %v3463_v61 }
 0xdf9   : > { %3464 = vrcp.f32 %v867_v63 }
 0xe03   : > { %v3465_v0 = vpop.eup %3464 }
 0xe04   : > { %v873_v17 = vmul.f32 %v3465_v0, %v871_v16  ;;  %v880_v26 = vsub.f32 1.0, %v3465_v0  ;;  %v886_v62 = vmul.f32 %v3465_v0, %v682_v20 }
 0xe06   : > { %875 = vrot.lane.b32.xlu0 %v873_v17, %s3639_s22 }
 0xe78   : > { %v876_v18 = vpop.permute.xlu0 %875 }
 0xe79   : > { %v878_v19 = vadd.f32 %v876_v18, %v857_v45 }
 0xe7b   : > { %3466 = vtanh.f32 %v878_v19 }
 0xe85   : > { %v3467_v23 = vpop.eup %3466 }
 0xe86   : > { %882 = vrot.lane.b32.xlu1 %v3467_v23, %s3641_s5 }
 0xef8   : > { %v883_v27 = vpop.permute.xlu1 %882 }
 0xef9   : > { %v885_v29 = vmul.f32 %v883_v27, %v880_v26 }
 0xefb   : > { %v887_v30 = vadd.f32 %v886_v62, %v885_v29 }
 0xefd   : > { %v889_v31 = vsel %vm373_vm3, %v787_v43, %v887_v30 }
 0xefe   : > { %3009 = vmatmul.mubr.msk.f32.vlgmr.msra.gmra.mrb[8].mxu1 %vm264_vm4, %v889_v31 }
 0xeff   : > { %3248 = vmatpush3.bf16.msra.mxu1 %v3986_v22  ;;  %3033 = vmatprep.mubr.msk.f32.mxu1 %vm3636_vm2, %v3637_v57 }
 0xf00   : > { %3249 = vmatprep.subr.bf16.mxu1 %v3635_v55 }
 0xfd1   : > { %v959_v28 = vpop.f32.mrb[8].mxu1 }
 0xfd2   : > { %v960_v32 = vadd.f32 %v3803_v5, %v959_v28  ;;  %v3010_v33 = vpop.f32.mrb[9].mxu1 }
 0xfd4   : > { %971 = vrot.lane.b32.xlu0 %v960_v32, %s3638_s9  ;;  %v963_v20 = vadd.f32 %v4409_v51, %v960_v32 }
 0xfd6   : > { %v2766_v34 = vmul.f32 -1.442695, %v963_v20 }
 0xfd8   : > { %3468 = vpow2.f32 %v2766_v34 }
 0xfe2   : > { %v3469_v35 = vpop.eup %3468 }
 0xfe3   : > { %v967_v36 = vadd.f32 1.0, %v3469_v35 }
 0xfe5   : > { %3470 = vrcp.f32 %v967_v36 }
 0xfef   : > { %v3471_v37 = vpop.eup %3470 }
 0xff0   : > { %v981_v44 = vsub.f32 1.0, %v3471_v37 }
0x1046   : > { %v972_v38 = vpop.permute.xlu0 %971 }
0x1047   : > { %v974_v39 = vmul.f32 %v3471_v37, %v972_v38 }
0x1049   : > { %976 = vrot.lane.b32.xlu1 %v974_v39, %s3639_s22 }
0x104d   : > { %987 = vrot.lane.b32.xlu1 %v889_v31, %s3643_s27 }
0x1051   : > { %1067 = vrot.lane.b32.xlu1 %v960_v32, %s3640_s1 }
0x10bb   : > { %v977_v40 = vpop.permute.xlu1 %976 }
0x10bc   : > { %v979_v41 = vadd.f32 %v4409_v51, %v977_v40 }
0x10be   : > { %3472 = vtanh.f32 %v979_v41 }
0x10bf   : > { %v988_v43 = vpop.permute.xlu1 %987 }
0x10c0   : > { %v990_v46 = vmul.f32 %v3471_v37, %v988_v43 }
0x10c3   : > { %v1068_v16 = vpop.permute.xlu1 %1067 }
0x10c8   : > { %v3473_v42 = vpop.eup %3472 }
0x10c9   : > { %983 = vrot.lane.b32.xlu0 %v3473_v42, %s3641_s5 }
0x113b   : > { %v984_v45 = vpop.permute.xlu0 %983 }
0x113c   : > { %v986_v58 = vmul.f32 %v984_v45, %v981_v44 }
0x113e   : > { %v991_v59 = vadd.f32 %v990_v46, %v986_v58 }
0x1140   : > { %993 = vrot.lane.b32.xlu0 %v991_v59, %s3641_s5 }
0x1144   : > { %1077 = vrot.lane.b32.xlu0 %v960_v32, %s3642_s23 }
0x11b2   : > { %v994_v60 = vpop.permute.xlu0 %993 }
0x11b3   : > { %3016 = vmatmul.mubr.msk.f32.vlgmr.msra.gmra.mrb[4].mxu0 %vm373_vm3, %v994_v60 }
0x11b4   : > { %3242 = vmatpush3.bf16.msra.mxu0 %v3957_v54  ;;  %3026 = vmatprep.mubr.msk.f32.mxu0 %vm3636_vm2, %v3637_v57 }
0x11b5   : > { %3243 = vmatprep.subr.bf16.mxu0 %v3635_v55 }
0x11b6   : > { %v1078_v27 = vpop.permute.xlu0 %1077 }
0x11b8   : > { %3245 = vmatpush3.bf16.msra.mxu0 %v3964_v56 }
0x11b9   : > { %3255 = vmatprep.subr.bf16.mxu0 %v3635_v55 }
0x1286   : > { %v1063_v61 = vpop.f32.mrb[4].mxu0 }
0x1287   : > { %v1064_v63 = vadd.f32 %v3818_v8, %v1063_v61  ;;  %v3017_v0 = vpop.f32.mrb[5].mxu0 }
0x1289   : > { %v1070_v17 = vadd.f32 %v1068_v16, %v1064_v63 }
0x128b   : > { %v2768_v18 = vmul.f32 -1.442695, %v1070_v17 }
0x128d   : > { %3474 = vpow2.f32 %v2768_v18 }
0x1297   : > { %v3475_v19 = vpop.eup %3474 }
0x1298   : > { %v1074_v23 = vadd.f32 1.0, %v3475_v19 }
0x129a   : > { %3476 = vrcp.f32 %v1074_v23 }
0x12a4   : > { %v3477_v26 = vpop.eup %3476 }
0x12a5   : > { %v1080_v62 = vmul.f32 %v3477_v26, %v1078_v27  ;;  %v1087_v32 = vsub.f32 1.0, %v3477_v26  ;;  %v1093_v20 = vmul.f32 %v3477_v26, %v889_v31 }
0x12a7   : > { %1082 = vrot.lane.b32.xlu1 %v1080_v62, %s3639_s22 }
0x1319   : > { %v1083_v29 = vpop.permute.xlu1 %1082 }
0x131a   : > { %v1085_v30 = vadd.f32 %v1083_v29, %v1064_v63 }
0x131c   : > { %3478 = vtanh.f32 %v1085_v30 }
0x1326   : > { %v3479_v28 = vpop.eup %3478 }
0x1327   : > { %1089 = vrot.lane.b32.xlu0 %v3479_v28, %s3641_s5 }
0x1399   : > { %v1090_v33 = vpop.permute.xlu0 %1089 }
0x139a   : > { %v1092_v34 = vmul.f32 %v1090_v33, %v1087_v32 }
0x139c   : > { %v1094_v35 = vadd.f32 %v1093_v20, %v1092_v34 }
0x139e   : > { %v1096_v36 = vsel %vm373_vm3, %v994_v60, %v1094_v35 }
0x139f   : > { %3027 = vmatmul.mubr.msk.f32.vlgmr.msra.gmra.mrb[6].mxu0 %vm264_vm4, %v1096_v36 }
0x13a0   : > { %3257 = vmatpush3.bf16.msra.mxu0 %v3986_v22  ;;  %3051 = vmatprep.mubr.msk.f32.mxu0 %vm3636_vm2, %v3637_v57 }
0x13a1   : > { %3258 = vmatprep.subr.bf16.mxu0 %v3635_v55 }
0x1472   : > { %v1166_v37 = vpop.f32.mrb[6].mxu0 }
0x1473   : > { %v1167_v38 = vadd.f32 %v3803_v5, %v1166_v37  ;;  %v3028_v39 = vpop.f32.mrb[7].mxu0 }
0x1475   : > { %1178 = vrot.lane.b32.xlu1 %v1167_v38, %s3638_s9  ;;  %v1170_v31 = vadd.f32 %v4408_v50, %v1167_v38 }
0x1477   : > { %v2770_v40 = vmul.f32 -1.442695, %v1170_v31 }
0x1479   : > { %3480 = vpow2.f32 %v2770_v40 }
0x1483   : > { %v3481_v41 = vpop.eup %3480 }
0x1484   : > { %v1174_v42 = vadd.f32 1.0, %v3481_v41 }
0x1486   : > { %3482 = vrcp.f32 %v1174_v42 }
0x1490   : > { %v3483_v43 = vpop.eup %3482 }
0x1491   : > { %v1188_v61 = vsub.f32 1.0, %v3483_v43 }
0x14e7   : > { %v1179_v44 = vpop.permute.xlu1 %1178 }
0x14e8   : > { %v1181_v45 = vmul.f32 %v3483_v43, %v1179_v44 }
0x14ea   : > { %1183 = vrot.lane.b32.xlu0 %v1181_v45, %s3639_s22 }
0x14ee   : > { %1194 = vrot.lane.b32.xlu0 %v1096_v36, %s3643_s27 }
0x14f2   : > { %1274 = vrot.lane.b32.xlu0 %v1167_v38, %s3640_s1 }
0x155c   : > { %v1184_v46 = vpop.permute.xlu0 %1183 }
0x155d   : > { %v1186_v58 = vadd.f32 %v4408_v50, %v1184_v46 }
0x155f   : > { %3484 = vtanh.f32 %v1186_v58 }
0x1560   : > { %v1195_v60 = vpop.permute.xlu0 %1194 }
0x1561   : > { %v1197_v0 = vmul.f32 %v3483_v43, %v1195_v60 }
0x1564   : > { %v1275_v27 = vpop.permute.xlu0 %1274 }
0x1569   : > { %v3485_v59 = vpop.eup %3484 }
0x156a   : > { %1190 = vrot.lane.b32.xlu1 %v3485_v59, %s3641_s5 }
0x15dc   : > { %v1191_v63 = vpop.permute.xlu1 %1190 }
0x15dd   : > { %v1193_v16 = vmul.f32 %v1191_v63, %v1188_v61 }
0x15df   : > { %v1198_v17 = vadd.f32 %v1197_v0, %v1193_v16 }
0x15e1   : > { %1200 = vrot.lane.b32.xlu1 %v1198_v17, %s3641_s5 }
0x15e5   : > { %1284 = vrot.lane.b32.xlu1 %v1167_v38, %s3642_s23 }
0x1653   : > { %v1201_v18 = vpop.permute.xlu1 %1200 }
0x1654   : > { %3034 = vmatmul.mubr.msk.f32.vlgmr.msra.gmra.mrb[10].mxu1 %vm373_vm3, %v1201_v18 }
0x1655   : > { %3251 = vmatpush3.bf16.msra.mxu1 %v3957_v54  ;;  %3044 = vmatprep.mubr.msk.f32.mxu1 %vm3636_vm2, %v3637_v57 }
0x1656   : > { %3252 = vmatprep.subr.bf16.mxu1 %v3635_v55 }
0x1657   : > { %v1285_v33 = vpop.permute.xlu1 %1284 }
0x1659   : > { %3254 = vmatpush3.bf16.msra.mxu1 %v3964_v56 }
0x165a   : > { %3264 = vmatprep.subr.bf16.mxu1 %v3635_v55 }
0x1727   : > { %v1270_v19 = vpop.f32.mrb[10].mxu1 }
0x1728   : > { %v1271_v23 = vadd.f32 %v3818_v8, %v1270_v19  ;;  %v3035_v26 = vpop.f32.mrb[11].mxu1 }
0x172a   : > { %v1277_v62 = vadd.f32 %v1275_v27, %v1271_v23 }
0x172c   : > { %v2772_v29 = vmul.f32 -1.442695, %v1277_v62 }
0x172e   : > { %3486 = vpow2.f32 %v2772_v29 }
0x1738   : > { %v3487_v30 = vpop.eup %3486 }
0x1739   : > { %v1281_v28 = vadd.f32 1.0, %v3487_v30 }
0x173b   : > { %3488 = vrcp.f32 %v1281_v28 }
0x1745   : > { %v3489_v32 = vpop.eup %3488 }
0x1746   : > { %v1287_v20 = vmul.f32 %v3489_v32, %v1285_v33  ;;  %v1294_v38 = vsub.f32 1.0, %v3489_v32  ;;  %v1300_v31 = vmul.f32 %v3489_v32, %v1096_v36 }
0x1748   : > { %1289 = vrot.lane.b32.xlu0 %v1287_v20, %s3639_s22 }
0x17ba   : > { %v1290_v34 = vpop.permute.xlu0 %1289 }
0x17bb   : > { %v1292_v35 = vadd.f32 %v1290_v34, %v1271_v23 }
0x17bd   : > { %3490 = vtanh.f32 %v1292_v35 }
0x17c7   : > { %v3491_v37 = vpop.eup %3490 }
0x17c8   : > { %1296 = vrot.lane.b32.xlu1 %v3491_v37, %s3641_s5 }
0x183a   : > { %v1297_v39 = vpop.permute.xlu1 %1296 }
0x183b   : > { %v1299_v40 = vmul.f32 %v1297_v39, %v1294_v38 }
0x183d   : > { %v1301_v41 = vadd.f32 %v1300_v31, %v1299_v40 }
0x183f   : > { %v1303_v42 = vsel %vm373_vm3, %v1201_v18, %v1301_v41 }
0x1840   : > { %3045 = vmatmul.mubr.msk.f32.vlgmr.msra.gmra.mrb[12].mxu1 %vm264_vm4, %v1303_v42 }
0x1841   : > { %3266 = vmatpush3.bf16.msra.mxu1 %v3986_v22  ;;  %3069 = vmatprep.mubr.msk.f32.mxu1 %vm3636_vm2, %v3637_v57 }
0x1842   : > { %3267 = vmatprep.subr.bf16.mxu1 %v3635_v55 }
0x1913   : > { %v1373_v43 = vpop.f32.mrb[12].mxu1 }
0x1914   : > { %v1374_v44 = vadd.f32 %v3803_v5, %v1373_v43  ;;  %v3046_v45 = vpop.f32.mrb[13].mxu1 }
0x1916   : > { %1385 = vrot.lane.b32.xlu0 %v1374_v44, %s3638_s9  ;;  %v1377_v36 = vadd.f32 %v4407_v49, %v1374_v44 }
0x1918   : > { %v2774_v46 = vmul.f32 -1.442695, %v1377_v36 }
0x191a   : > { %3492 = vpow2.f32 %v2774_v46 }
0x1924   : > { %v3493_v58 = vpop.eup %3492 }
0x1925   : > { %v1381_v59 = vadd.f32 1.0, %v3493_v58 }
0x1927   : > { %3494 = vrcp.f32 %v1381_v59 }
0x1931   : > { %v3495_v60 = vpop.eup %3494 }
0x1932   : > { %v1395_v18 = vsub.f32 1.0, %v3495_v60 }
0x1988   : > { %v1386_v22 = vpop.permute.xlu0 %1385 }
0x1989   : > { %v1388_v61 = vmul.f32 %v3495_v60, %v1386_v22 }
0x198b   : > { %1390 = vrot.lane.b32.xlu1 %v1388_v61, %s3639_s22 }
0x198f   : > { %1401 = vrot.lane.b32.xlu1 %v1303_v42, %s3643_s27 }
0x1993   : > { %1481 = vrot.lane.b32.xlu1 %v1374_v44, %s3640_s1 }
0x19fd   : > { %v1391_v63 = vpop.permute.xlu1 %1390 }
0x19fe   : > { %v1393_v0 = vadd.f32 %v4407_v49, %v1391_v63 }
0x1a00   : > { %3496 = vtanh.f32 %v1393_v0 }
0x1a01   : > { %v1402_v17 = vpop.permute.xlu1 %1401 }
0x1a02   : > { %v1404_v23 = vmul.f32 %v3495_v60, %v1402_v17 }
0x1a05   : > { %v1482_v32 = vpop.permute.xlu1 %1481 }
0x1a0a   : > { %v3497_v16 = vpop.eup %3496 }
0x1a0b   : > { %1397 = vrot.lane.b32.xlu0 %v3497_v16, %s3641_s5 }
0x1a7d   : > { %v1398_v19 = vpop.permute.xlu0 %1397 }
0x1a7e   : > { %v1400_v26 = vmul.f32 %v1398_v19, %v1395_v18 }
0x1a80   : > { %v1405_v27 = vadd.f32 %v1404_v23, %v1400_v26 }
0x1a82   : > { %1407 = vrot.lane.b32.xlu0 %v1405_v27, %s3641_s5 }
0x1a86   : > { %1491 = vrot.lane.b32.xlu0 %v1374_v44, %s3642_s23 }
0x1af4   : > { %v1408_v62 = vpop.permute.xlu0 %1407 }
0x1af5   : > { %3052 = vmatmul.mubr.msk.f32.vlgmr.msra.gmra.mrb[8].mxu0 %vm373_vm3, %v1408_v62 }
0x1af6   : > { %3260 = vmatpush3.bf16.msra.mxu0 %v3957_v54  ;;  %3062 = vmatprep.mubr.msk.f32.mxu0 %vm3636_vm2, %v3637_v57 }
0x1af7   : > { %3261 = vmatprep.subr.bf16.mxu0 %v3635_v55 }
0x1af8   : > { %v1492_v37 = vpop.permute.xlu0 %1491 }
0x1afa   : > { %3263 = vmatpush3.bf16.msra.mxu0 %v3964_v56 }
0x1afb   : > { %3079 = vmatprep.subr.mxu0 %v3637_v57 }
0x1bc8   : > { %v1477_v29 = vpop.f32.mrb[8].mxu0 }
0x1bc9   : > { %v1478_v30 = vadd.f32 %v3818_v8, %v1477_v29  ;;  %v3053_v28 = vpop.f32.mrb[9].mxu0 }
0x1bcb   : > { %v1484_v33 = vadd.f32 %v1482_v32, %v1478_v30 }
0x1bcd   : > { %v2776_v20 = vmul.f32 -1.442695, %v1484_v33 }
0x1bcf   : > { %3498 = vpow2.f32 %v2776_v20 }
0x1bd9   : > { %v3499_v34 = vpop.eup %3498 }
0x1bda   : > { %v1488_v35 = vadd.f32 1.0, %v3499_v34 }
0x1bdc   : > { %3500 = vrcp.f32 %v1488_v35 }
0x1be6   : > { %v3501_v54 = vpop.eup %3500 }
0x1be7   : > { %v1494_v38 = vmul.f32 %v3501_v54, %v1492_v37  ;;  %v1501_v40 = vsub.f32 1.0, %v3501_v54  ;;  %v1507_v43 = vmul.f32 %v3501_v54, %v1303_v42 }
0x1be9   : > { %1496 = vrot.lane.b32.xlu1 %v1494_v38, %s3639_s22 }
0x1c5b   : > { %v1497_v39 = vpop.permute.xlu1 %1496 }
0x1c5c   : > { %v1499_v56 = vadd.f32 %v1497_v39, %v1478_v30 }
0x1c5e   : > { %3502 = vtanh.f32 %v1499_v56 }
0x1c68   : > { %v3503_v31 = vpop.eup %3502 }
0x1c69   : > { %1503 = vrot.lane.b32.xlu0 %v3503_v31, %s3641_s5 }
0x1cdb   : > { %v1504_v41 = vpop.permute.xlu0 %1503 }
0x1cdc   : > { %v1506_v44 = vmul.f32 %v1504_v41, %v1501_v40 }
0x1cde   : > { %v1508_v45 = vadd.f32 %v1507_v43, %v1506_v44  ;;  %v3268_v43 = vpack.c.bf16 %v3828_v10, %v3823_v9 }
0x1ce0   : > { %v1510_v36 = vsel %vm373_vm3, %v1408_v62, %v1508_v45 }
0x1ce1   : > { %3063 = vmatmul.mubr.msk.f32.vlgmr.msra.gmra.mrb[10].mxu0 %vm264_vm4, %v1510_v36 }
0x1ce2   : > { %3080 = vmatpush3.msra.mxu0 %v3838_v12  ;;  %3081 = vmatprep.mubr.msk.f32.mxu0 %vm3636_vm2, %v3637_v57 }
0x1ce3   : > { %3270 = vmatprep.subr.bf16.mxu0 %v3635_v55 }
0x1db4   : > { %v1580_v46 = vpop.f32.mrb[10].mxu0 }
0x1db5   : > { %v1581_v58 = vadd.f32 %v3803_v5, %v1580_v46  ;;  %v3064_v59 = vpop.f32.mrb[11].mxu0 }
0x1db7   : > { %1592 = vrot.lane.b32.xlu1 %v1581_v58, %s3638_s9  ;;  %v1584_v42 = vadd.f32 %v4406_v48, %v1581_v58 }
0x1db9   : > { %v2778_v60 = vmul.f32 -1.442695, %v1584_v42 }
0x1dbb   : > { %3504 = vpow2.f32 %v2778_v60 }
0x1dc5   : > { %v3505_v22 = vpop.eup %3504 }
0x1dc6   : > { %v1588_v61 = vadd.f32 1.0, %v3505_v22 }
0x1dc8   : > { %3506 = vrcp.f32 %v1588_v61 }
0x1dd2   : > { %v3507_v63 = vpop.eup %3506 }
0x1dd3   : > { %v1602_v26 = vsub.f32 1.0, %v3507_v63 }
0x1e29   : > { %v1593_v0 = vpop.permute.xlu1 %1592 }
0x1e2a   : > { %v1595_v16 = vmul.f32 %v3507_v63, %v1593_v0 }
0x1e2c   : > { %1597 = vrot.lane.b32.xlu0 %v1595_v16, %s3639_s22  ;;  %v1884_v16 = vld [vmem:[%s4378_s21 + $0x8] sm:$0xff] }
0x1e30   : > { %1608 = vrot.lane.b32.xlu0 %v1510_v36, %s3643_s27 }
0x1e34   : > { %1688 = vrot.lane.b32.xlu0 %v1581_v58, %s3640_s1 }
0x1e9e   : > { %v1598_v17 = vpop.permute.xlu0 %1597 }
0x1e9f   : > { %v1600_v18 = vadd.f32 %v4406_v48, %v1598_v17  ;;  %v1885_v17 = vld [vmem:[%s4378_s21 + $0x10] sm:$0xff] }
0x1ea1   : > { %3508 = vtanh.f32 %v1600_v18 }
0x1ea2   : > { %v1609_v23 = vpop.permute.xlu0 %1608 }
0x1ea3   : > { %v1611_v62 = vmul.f32 %v3507_v63, %v1609_v23 }
0x1ea6   : > { %v1689_v34 = vpop.permute.xlu0 %1688 }
0x1eab   : > { %v3509_v19 = vpop.eup %3508 }
0x1eac   : > { %1604 = vrot.lane.b32.xlu1 %v3509_v19, %s3641_s5  ;;  %v1886_v19 = vld [vmem:[%s4378_s21 + $0x18] sm:$0xff] }
0x1ead   : > { %v4180_v23 = vpack.c.bf16 %v1886_v19, %v1885_v17  ;;  %v2788_v17 = vld [vmem:[%s4370_s13] ss:$0 sm:$0xff] }
0x1f1e   : > { %v1605_v27 = vpop.permute.xlu1 %1604 }
0x1f1f   : > { %v1607_v29 = vmul.f32 %v1605_v27, %v1602_v26  ;;  %v1887_v26 = vld [vmem:[%s4378_s21 + $0x20] sm:$0xff]  ;;  %v1888_v27 = vld [vmem:[%s4378_s21 + $0x28] sm:$0xff] }
0x1f21   : > { %v1612_v30 = vadd.f32 %v1611_v62, %v1607_v29  ;;  %v4190_v62 = vpack.c.bf16 %v1888_v27, %v1887_v26  ;;  %v2133_v27 = vld [vmem:[%s4371_s14] sm:$0xff] }
0x1f23   : > { %1614 = vrot.lane.b32.xlu1 %v1612_v30, %s3641_s5 }
0x1f27   : > { %1698 = vrot.lane.b32.xlu1 %v1581_v58, %s3642_s23  ;;  %s4412_s23 = sld [smem:[#allocation14_spill]] }
0x1f95   : > { %v1615_v28 = vpop.permute.xlu1 %1614 }
0x1f96   : > { %3070 = vmatmul.mubr.msk.f32.vlgmr.msra.gmra.mrb[14].mxu1 %vm373_vm3, %v1615_v28 }
0x1f97   : > { %3076 = vmatprep.mubr.msk.f32.mxu1 %vm3636_vm2, %v3637_v57  ;;  %3269 = vmatpush3.bf16.msra.mxu1 %v3268_v43 }
0x1f98   : > { %3084 = vmatprep.subr.mxu1 %v3637_v57 }
0x1f99   : > { %v1699_v56 = vpop.permute.xlu1 %1698 }
0x2069   : > { %v1684_v32 = vpop.f32.mrb[14].mxu1 }
0x206a   : > { %v1685_v33 = vadd.f32 %v3818_v8, %v1684_v32  ;;  %v3071_v20 = vpop.f32.mrb[15].mxu1 }
0x206c   : > { %v1691_v35 = vadd.f32 %v1689_v34, %v1685_v33 }
0x206e   : > { %v2780_v54 = vmul.f32 -1.442695, %v1691_v35 }
0x2070   : > { %3510 = vpow2.f32 %v2780_v54 }
0x207a   : > { %v3511_v37 = vpop.eup %3510 }
0x207b   : > { %v1695_v38 = vadd.f32 1.0, %v3511_v37 }
0x207d   : > { %3512 = vrcp.f32 %v1695_v38  ;;  %v1891_v38 = vld [vmem:[%s4367_s10] sm:$0xff] }
0x2087   : > { %v3513_v39 = vpop.eup %3512 }
0x2088   : > { %v1701_v31 = vmul.f32 %v3513_v39, %v1699_v56  ;;  %v1708_v45 = vsub.f32 1.0, %v3513_v39  ;;  %v1714_v58 = vmul.f32 %v3513_v39, %v1510_v36  ;;  %v1883_v36 = vld [vmem:[%s4378_s21] sm:$0xff]  ;;  %v1889_v56 = vld [vmem:[%s4378_s21 + $0x30] sm:$0xff] }
0x2089   : > { %v4174_v18 = vpack.c.bf16 %v1884_v16, %v1883_v36 }
0x208a   : > { %1703 = vrot.lane.b32.xlu0 %v1701_v31, %s3639_s22  ;;  %v1890_v31 = vld [vmem:[%s4378_s21 + $0x38] sm:$0xff] }
0x20fc   : > { %v1704_v40 = vpop.permute.xlu0 %1703 }
0x20fd   : > { %v1706_v41 = vadd.f32 %v1704_v40, %v1685_v33  ;;  %v3280_v40 = vpack.c.bf16 %v1890_v31, %v1889_v56  ;;  %v2459_v56 = vld [vmem:[%s4376_s19 + $0x28] sm:$0xff] }
0x20ff   : > { %3514 = vtanh.f32 %v1706_v41  ;;  %v1892_v41 = vld [vmem:[%s4368_s11] sm:$0xff] }
0x2109   : > { %v3515_v44 = vpop.eup %3514 }
0x210a   : > { %1710 = vrot.lane.b32.xlu1 %v3515_v44, %s3641_s5 }
0x217c   : > { %v1711_v46 = vpop.permute.xlu1 %1710 }
0x217d   : > { %v1713_v59 = vmul.f32 %v1711_v46, %v1708_v45 }
0x217f   : > { %v1715_v42 = vadd.f32 %v1714_v58, %v1713_v59 }
0x2181   : > { %v1717_v60 = vsel %vm373_vm3, %v1615_v28, %v1715_v42 }
0x2182   : > { %1725 = vrot.lane.b32.xlu0 %v1717_v60, %s3641_s5 }
0x21f4   : > { %v1726_v22 = vpop.permute.xlu0 %1725 }
0x21f5   : > { %3077 = vmatmul.mubr.msk.f32.vlgmr.msra.gmra.mrb[16].mxu1 %vm373_vm3, %v1726_v22 }
0x21f6   : > { %3086 = vmatprep.mubr.msk.f32.mxu1 %vm3636_vm2, %v3637_v57 }
0x22c8   : > { %v1795_v61 = vpop.f32.mrb[16].mxu1 }
0x22c9   : > { %v1796_v63 = vadd.f32 %v3833_v11, %v1795_v61  ;;  %v3078_v0 = vpop.f32.mrb[17].mxu1 }
0x22ca   : > { %v2787_v0 = vld [vmem:[%s4369_s12] ss:$0 sm:$0xff] }
0x22cb   : > { %3082 = vmatmul.mubr.msk.f32.vlgmr.msra.gmra.mrb[12].mxu0 %vm118_vm1, %v1796_v63 }
0x22cc   : > { %3105 = vmatprep.mubr.msk.f32.mxu0 %vm3636_vm2, %v3637_v57  ;;  %3272 = vmatpush3.bf16.msra.mxu0 %v4174_v18 }
0x22cd   : > { %3273 = vmatprep.subr.bf16.mxu0 %v3635_v55 }
0x22d0   : > { %3275 = vmatpush3.bf16.msra.mxu0 %v4180_v23 }
0x22d1   : > { %3276 = vmatprep.subr.bf16.mxu0 %v3635_v55 }
0x22d4   : > { %3278 = vmatpush3.bf16.msra.mxu0 %v4190_v62 }
0x22d5   : > { %3279 = vmatprep.subr.bf16.mxu0 %v3635_v55 }
0x22d8   : > { %3281 = vmatpush3.bf16.msra.mxu0 %v3280_v40 }
0x22d9   : > { %3127 = vmatprep.subr.mxu0 %v3637_v57 }
0x239e   : > { %v1868_v29 = vpop.f32.mrb[12].mxu0 }
0x239f   : > { %v1872_v30 = vmul.f32 %v1868_v29, %v3843_v13  ;;  %v3083_v28 = vpop.f32.mrb[13].mxu0 }
0x23a1   : > { %v1874_v32 = vsel %vm1873_vm5, %v1872_v30, 0.0 }
0x23a2   : > { %v1875_v33 = vrot.slane %v1874_v32, 4 }
0x23a4   : > { %v1876_v20 = vadd.f32 %v1875_v33, %v1874_v32 }
0x23a6   : > { %v1877_v34 = vrot.slane %v1876_v20, 2 }
0x23a8   : > { %v1878_v35 = vadd.f32 %v1877_v34, %v1876_v20  ;;  %v2454_v20 = vld [vmem:[%s4376_s19] sm:$0xff]  ;;  %v2455_v34 = vld [vmem:[%s4376_s19 + $0x8] sm:$0xff] }
0x23aa   : > { %v1879_v54 = vrot.slane %v1878_v35, 1 }
0x23ac   : > { %v1880_v37 = vadd.f32 %v1879_v54, %v1878_v35  ;;  %v2456_v35 = vld [vmem:[%s4376_s19 + $0x10] sm:$0xff]  ;;  %v3319_v54 = vpack.c.bf16 %v2455_v34, %v2454_v20 }
0x23ae   : > { %v1882_v39 = vsel %vm1881_vm6, %v3622_v14, %v1880_v37  ;;  %v2457_v37 = vld [vmem:[%s4376_s19 + $0x18] sm:$0xff] }
0x23af   : > { %3085 = vmatpush3.msra.mxu1 %v1882_v39 }
0x23b0   : > { %3087 = vmatmul.mubr.msk.f32.vlgmr.msra.gmra.mrb[18].mxu1 %vm118_vm1, %v1891_v38  ;;  %3282 = vmatprep.subr.bf16.mxu1 %v3635_v55  ;;  %v3322_v38 = vpack.c.bf16 %v2457_v37, %v2456_v35  ;;  %v2624_v37 = vstv %s3630_s4  ;;  %s247_s4 = sadd.s32 1, %s3630_s4  }
0x23b1   : > { %3284 = vmatpush3.bf16.msra.mxu1 %v4174_v18  ;;  %3124 = vmatprep.mubr.msk.f32.mxu1 %vm3636_vm2, %v3637_v57  ;;  %vm2625_vm7 = vcmp.eq.s32.totalorder %v3888_v24, %v2624_v37  ;;  %p244_p8 = scmp.ge.s32.totalorder %s247_s4, 7  }
0x23b2   : > { %3285 = vmatprep.subr.bf16.mxu1 %v3635_v55  ;;  %vm2702_vm9 = vcmask (%p244_p8), 522240  }
0x23b5   : > { %3287 = vmatpush3.bf16.msra.mxu1 %v4180_v23 }
0x23b6   : > { %3288 = vmatprep.subr.bf16.mxu1 %v3635_v55 }
0x23b9   : > { %3290 = vmatpush3.bf16.msra.mxu1 %v4190_v62 }
0x23ba   : > { %3291 = vmatprep.subr.bf16.mxu1 %v3635_v55 }
0x23bd   : > { %3293 = vmatpush3.bf16.msra.mxu1 %v3280_v40 }
0x23be   : > { %3294 = vmatprep.subr.bf16.mxu1 %v3635_v55 }
0x2483   : > { %v1962_v43 = vpop.f32.mrb[18].mxu1 }
0x2484   : > { %v1963_v44 = vadd.f32 %v1962_v43, %v1892_v41  ;;  %v3088_v45 = vpop.f32.mrb[19].mxu1 }
0x2485   : > { %v2792_v45 = vld [vmem:[%s4373_s16] ss:$0 sm:$0xff] }
0x2486   : > { %3106 = vmatmul.mubr.msk.f32.vlgmr.msra.gmra.mrb[14].mxu0 %vm1873_vm5, %v1963_v44 }
0x2487   : > { %3129 = vmatprep.mubr.msk.f32.mxu0 %vm3636_vm2, %v3637_v57 }
0x2559   : > { %v2035_v46 = vpop.f32.mrb[14].mxu0 }
0x255a   : > { %v2039_v58 = vsub.f32 %v1963_v44, %v2035_v46  ;;  %v3107_v59 = vpop.f32.mrb[15].mxu0 }
0x255b   : > { %v2793_v59 = vld [vmem:[%s4374_s17] ss:$0 sm:$0xff] }
0x255c   : > { %v2040_v42 = vmul.f32 %v2039_v58, %v2039_v58 }
0x255e   : > { %3125 = vmatmul.mubr.msk.f32.vlgmr.msra.gmra.mrb[20].mxu1 %vm1873_vm5, %v2040_v42 }
0x255f   : > { %3296 = vmatpush3.bf16.msra.mxu1 %v4174_v18  ;;  %3148 = vmatprep.mubr.msk.f32.mxu1 %vm3636_vm2, %v3637_v57 }
0x2560   : > { %3297 = vmatprep.subr.bf16.mxu1 %v3635_v55 }
0x2563   : > { %3299 = vmatpush3.bf16.msra.mxu1 %v4180_v23 }
0x2564   : > { %3300 = vmatprep.subr.bf16.mxu1 %v3635_v55 }
0x2567   : > { %3302 = vmatpush3.bf16.msra.mxu1 %v4190_v62 }
0x2568   : > { %3303 = vmatprep.subr.bf16.mxu1 %v3635_v55 }
0x256b   : > { %3305 = vmatpush3.bf16.msra.mxu1 %v3280_v40 }
0x256c   : > { %3170 = vmatprep.subr.mxu1 %v3637_v57 }
0x2631   : > { %v2110_v60 = vpop.f32.mrb[20].mxu1 }
0x2632   : > { %v2111_v22 = vadd.f32 1e-05, %v2110_v60  ;;  %v3126_v61 = vpop.f32.mrb[21].mxu1 }
0x2633   : > { %v2461_v61 = vld [vmem:[%s4376_s19 + $0x38] sm:$0xff] }
0x2634   : > { %3516 = vrsqrt.f32 %v2111_v22  ;;  %v2460_v22 = vld [vmem:[%s4376_s19 + $0x30] sm:$0xff] }
0x263e   : > { %v3517_v63 = vpop.eup %3516 }
0x263f   : > { %v2115_v36 = vmul.f32 %v3517_v63, %v2039_v58  ;;  %v3328_v63 = vpack.c.bf16 %v2461_v61, %v2460_v22 }
0x2641   : > { %v2123_v16 = vmul.f32 %v2787_v0, %v2115_v36  ;;  %v2451_v0 = vsub.s32 0, %v3888_v24 }
0x2643   : > { %v2124_v19 = vadd.f32 %v2123_v16, %v1882_v39  ;;  %v2458_v39 = vld [vmem:[%s4376_s19 + $0x20] sm:$0xff] }
0x2644   : > { %v3325_v31 = vpack.c.bf16 %v2459_v56, %v2458_v39 }
0x2645   : > { %v2132_v26 = vadd.f32 %v2788_v17, %v2124_v19 }
0x2647   : > { %3128 = vmatpush3.msra.mxu0 %v2132_v26 }
0x2648   : > { %3130 = vmatmul.mubr.msk.f32.vlgmr.msra.gmra.mrb[16].mxu0 %vm118_vm1, %v2133_v27  ;;  %3306 = vmatprep.subr.bf16.mxu0 %v3635_v55 }
0x2649   : > { %3308 = vmatpush3.bf16.msra.mxu0 %v4174_v18  ;;  %3167 = vmatprep.mubr.msk.f32.mxu0 %vm3636_vm2, %v3637_v57  ;;  %v2134_v18 = vld [vmem:[%s4372_s15] sm:$0xff] }
0x264a   : > { %3309 = vmatprep.subr.bf16.mxu0 %v3635_v55 }
0x264d   : > { %3311 = vmatpush3.bf16.msra.mxu0 %v4180_v23 }
0x264e   : > { %3312 = vmatprep.subr.bf16.mxu0 %v3635_v55 }
0x2651   : > { %3314 = vmatpush3.bf16.msra.mxu0 %v4190_v62 }
0x2652   : > { %3315 = vmatprep.subr.bf16.mxu0 %v3635_v55 }
0x2655   : > { %3317 = vmatpush3.bf16.msra.mxu0 %v3280_v40 }
0x2656   : > { %3318 = vmatprep.subr.bf16.mxu0 %v3635_v55 }
0x271b   : > { %v2204_v29 = vpop.f32.mrb[16].mxu0 }
0x271c   : > { %v2205_v30 = vadd.f32 %v2204_v29, %v2134_v18  ;;  %v3131_v28 = vpop.f32.mrb[17].mxu0 }
0x271e   : > { %3149 = vmatmul.mubr.msk.f32.vlgmr.msra.gmra.mrb[22].mxu1 %vm1873_vm5, %v2205_v30 }
0x271f   : > { %3172 = vmatprep.mubr.msk.f32.mxu1 %vm3636_vm2, %v3637_v57 }
0x27f1   : > { %v2277_v23 = vpop.f32.mrb[22].mxu1 }
0x27f2   : > { %v2281_v32 = vsub.f32 %v2205_v30, %v2277_v23  ;;  %v3150_v62 = vpop.f32.mrb[23].mxu1 }
0x27f4   : > { %v2282_v33 = vmul.f32 %v2281_v32, %v2281_v32 }
0x27f6   : > { %3168 = vmatmul.mubr.msk.f32.vlgmr.msra.gmra.mrb[18].mxu0 %vm1873_vm5, %v2282_v33 }
0x27f7   : > { %3191 = vmatprep.mubr.msk.f32.mxu0 %vm3636_vm2, %v3637_v57  ;;  %3320 = vmatpush3.bf16.msra.mxu0 %v3319_v54 }
0x27f8   : > { %3321 = vmatprep.subr.bf16.mxu0 %v3635_v55 }
0x27fb   : > { %3323 = vmatpush3.bf16.msra.mxu0 %v3322_v38  ;;  %v2628_v38 = vrot.slane %v3622_v14, 1 }
0x27fc   : > { %3324 = vmatprep.subr.bf16.mxu0 %v3635_v55 }
0x27ff   : > { %3326 = vmatpush3.bf16.msra.mxu0 %v3325_v31 }
0x2800   : > { %3327 = vmatprep.subr.bf16.mxu0 %v3635_v55  ;;  %v2375_v55 = vld [vmem:[%s4375_s18] sm:$0x1] }
0x2803   : > { %3329 = vmatpush3.bf16.msra.mxu0 %v3328_v63 }
0x28c9   : > { %v2352_v40 = vpop.f32.mrb[18].mxu0 }
0x28ca   : > { %v2353_v41 = vadd.f32 1e-05, %v2352_v40  ;;  %v3169_v43 = vpop.f32.mrb[19].mxu0  ;;  %v4417_v40 = vmov %v4409_v51 }
0x28cc   : > { %3518 = vrsqrt.f32 %v2353_v41 }
0x28d6   : > { %v3519_v44 = vpop.eup %3518 }
0x28d7   : > { %v2357_v46 = vmul.f32 %v3519_v44, %v2281_v32 }
0x28d9   : > { %v2365_v58 = vmul.f32 %v2792_v45, %v2357_v46  ;;  %v4416_v45 = vmov %v4408_v50 }
0x28db   : > { %v2366_v42 = vadd.f32 %v2365_v58, %v2132_v26  ;;  %v2795_v26 = vld [vmem:[%s4412_s23] ss:$0 sm:$0xff] }
0x28dd   : > { %v2374_v60 = vadd.f32 %v2793_v59, %v2366_v42 }
0x28df   : > { %3171 = vmatpush3.msra.mxu1 %v2374_v60 }
0x28e0   : > { %3173 = vmatmul.mubr.msk.f32.vlgmr.msra.gmra.mrb[24].mxu1 %vm118_vm1, %v2375_v55  ;;  %3194 = vmatprep.subr.mxu1 %v3637_v57 }
0x28e1   : > { %3195 = vmatpush3.msra.mxu1 %v3838_v12  ;;  %3196 = vmatprep.mubr.msk.f32.mxu1 %vm3636_vm2, %v3637_v57 }
0x28e2   : > { %3199 = vmatprep.subr.mxu1 %v3637_v57 }
0x29b3   : > { %v2445_v36 = vpop.f32.mrb[24].mxu1 }
0x29b4   : > { %v2452_v16 = vrot.slane %v2445_v36, %v2451_v0  ;;  %v3174_v17 = vpop.f32.mrb[25].mxu1  ;;  %v4414_v36 = vmov %v4406_v48 }
0x29b6   : > { %v2453_v19 = vmul.f32 %v2452_v16, %v3843_v13 }
0x29b8   : > { %3192 = vmatmul.mubr.msk.f32.vlgmr.msra.gmra.mrb[20].mxu0 %vm1873_vm5, %v2453_v19 }
0x2a8b   : > { %v2538_v27 = vpop.f32.mrb[20].mxu0 }
0x2a8c   : > { %v2539_v18 = vadd.f32 %v2795_v26, %v2538_v27  ;;  %v3193_v29 = vpop.f32.mrb[21].mxu0 }
0x2a8e   : > { %v2542_v21 = vadd.f32 %v3626_v21, %v2539_v18  }
0x2a90   : > { %3197 = vmatmul.mubr.msk.f32.vlgmr.msra.gmra.mrb[26].mxu1 %vm118_vm1, %v2542_v21 }
0x2a91   : > { %3200 = vmatpush3.msra.mxu1 %v3851_v15  ;;  %3201 = vmatprep.mubr.msk.f32.mxu1 %vm3636_vm2, %v3637_v57 }
0x2a94   : > { %3202 = vmatmul.mubr.msk.f32.vlgmr.msra.gmra.mrb[28].mxu1 %vm118_vm1, %v2542_v21 }
0x2b63   : > { %v2612_v30 = vpop.f32.mrb[26].mxu1 }
0x2b64   : > { %v2616_v28 = vmul.f32 %v2612_v30, %v3843_v13  ;;  %v3198_v23 = vpop.f32.mrb[27].mxu1  ;;  %v4415_v30 = vmov %v4407_v49 }
0x2b66   : > { %v2617_v32 = vsel %vm1873_vm5, %v2616_v28, 0.0  ;;  %v4419_v28 = vmov %v4411_v53 }
0x2b67   : > { %v2618_v62 = vrot.slane %v2617_v32, 4  ;;  %v2698_v33 = vpop.f32.mrb[28].mxu1 }
0x2b68   : > { %v2699_v42 = vadd.f32 %v3893_v25, %v2698_v33   ;;  %v3203_v20 = vpop.f32.mrb[29].mxu1 }
0x2b69   : > { %v2619_v34 = vadd.f32 %v2618_v62, %v2617_v32 }
0x2b6b   : > { %v2620_v35 = vrot.slane %v2619_v34, 2 }
0x2b6d   : > { %v2621_v54 = vadd.f32 %v2620_v35, %v2619_v34  ;;  %v4418_v34 = vmov %v4410_v52 }
0x2b6e   :  { %246 = sbr.rel (!%p244_p8) target bundleno = 273 (0x111), region = 127 }
0x2b6f   : > { %v2622_v57 = vrot.slane %v2621_v54, 1 }
0x2b71   : > { %v2623_v39 = vadd.f32 %v2622_v57, %v2621_v54 }
0x2b73   : > { %v2626_v56 = vsel %vm2625_vm7, %v2623_v39, %v3590_v47   ;;  %v2631_v14 = vsel %vm2630_vm8, %v2628_v38, %v2623_v39  }
0x2b74   : > { %v4413_v47 = vmov %v2626_v56  ;;  %2703 = vst.msk [vmem:[%s4381_s24] sm:$0x7f] (%p244_p8), %vm2702_vm9, %v2626_v56 }
0x2b75   :  { %2708 = vsyncpa [#allocation3], 1 }

</bundles_post_ra>
